<compile_context>
chip_gen: v7x
topology: tpu7x:2x2x1
jax: 0.10.0
libtpu: 0.0.40
codegen_flags: <defaults>
</compile_context>

<pallas_src>
import math

import numpy as np

import jax
import jax.numpy as jnp
from jax.experimental import pallas as pl
from jax.experimental.pallas import tpu as pltpu

LRELU_SLOPE = 0.2
BA_GAIN = math.sqrt(2.0)

COLOR_MAP = [
    [0.00, 0.00, 0.00],
    [0.90, 0.10, 0.10], [0.10, 0.90, 0.10], [0.10, 0.10, 0.90],
    [0.90, 0.90, 0.10], [0.90, 0.10, 0.90], [0.10, 0.90, 0.90],
    [0.60, 0.30, 0.10], [0.30, 0.60, 0.10], [0.10, 0.30, 0.60],
    [0.50, 0.50, 0.50],
    [1.00, 1.00, 1.00], [0.25, 0.75, 0.50],
]

_BF16 = jnp.bfloat16
_F32 = jnp.float32


# -------------------- trace-time constant spatial operators --------------------

def _batch_bcast(B, P):
    """(B, B*P) one-hot: column m belongs to batch m // P."""
    m = np.arange(B * P)
    mat = (np.arange(B)[:, None] == (m // P)[None, :]).astype(np.float32)
    return jnp.asarray(mat, _F32)


def _pixel_bcast(P, B):
    """(P, B*P) one-hot: column m is pixel m % P of its image."""
    m = np.arange(B * P)
    mat = (np.arange(P)[:, None] == (m % P)[None, :]).astype(np.float32)
    return jnp.asarray(mat, _F32)


def _shift_matrices(B, H, W):
    """(9, M, M): right-multiplying by tap t gives the zero-padded (dy,dx) shifted image."""
    M = B * H * W
    m = np.arange(M)
    b = m // (H * W)
    i = (m // W) % H
    j = m % W
    mats = np.zeros((9, M, M), np.float32)
    taps = [(dy, dx) for dy in (-1, 0, 1) for dx in (-1, 0, 1)]  # t = (ky)*3 + kx
    for t, (dy, dx) in enumerate(taps):
        ii = i + dy
        jj = j + dx
        valid = (ii >= 0) & (ii < H) & (jj >= 0) & (jj < W)
        src = b * H * W + ii * W + jj
        mats[t, src[valid], m[valid]] = 1.0
    return jnp.asarray(mats, _BF16)


def _interp_1d(n):
    """1-D interpolative x2 upsampling (upfirdn2d.upsample2d with filter [1,2,1])."""
    v = np.zeros((n, 2 * n), np.float32)
    for k in range(n):
        v[k, 2 * k + 1] = 1.0          # odd outputs: pass-through of x[k]
        v[k, 2 * k] += 0.5             # even output 2k: 0.5*(x[k-1] + x[k])
        if k + 1 < n:
            v[k, 2 * k + 2] += 0.5
    return v


def _upsample_matrix(B, H, W):
    """(B*H*W, B*2H*2W): x_flat @ U == InterpolativeUpsampler([1,2,1])(x)."""
    vh = _interp_1d(H)
    vw = _interp_1d(W)
    block = np.einsum("io,jp->ijop", vh, vw).reshape(H * W, 4 * H * W)
    U = np.zeros((B * H * W, B * 4 * H * W), np.float32)
    for b in range(B):
        U[b * H * W:(b + 1) * H * W, b * 4 * H * W:(b + 1) * 4 * H * W] = block
    return jnp.asarray(U, _BF16)


# ------------------------------ fused kernel ------------------------------

def _make_fused_kernel(plan):
    """plan = (n_blocks_stage0, ((has_trans, n_blocks), ...)) — static structure."""
    n_blocks0, up_stages = plan

    def kernel(*refs):
        out_ref = refs[-1]
        pos = [0]

        def take():
            r = refs[pos[0]]
            pos[0] += 1
            return r

        def mxu(a_bf16, b_bf16):
            return jnp.dot(a_bf16, b_bf16, preferred_element_type=jnp.float32)

        def residual_block(x, s_ref):
            w1 = take()[...]            # (E, C)  bf16
            b1 = take()[...]            # (E, 1)  f32
            w2_ref = take()             # (9, E, E) bf16  (dense block-diagonal taps)
            b2 = take()[...]            # (E, 1)  f32
            w3 = take()[...]            # (C, E)  bf16
            # LinearLayer1 (1x1) + NonLinearity1
            y = mxu(w1, x.astype(_BF16)) + b1
            y = jnp.maximum(y, LRELU_SLOPE * y)
            # LinearLayer2 (grouped 3x3): sum over taps of W_t @ (Y @ S_t)
            yb = y.astype(_BF16)
            acc = None
            for t in range(9):
                shifted = mxu(yb, s_ref[t])                       # (E, M) f32
                term = mxu(w2_ref[t], shifted.astype(_BF16))      # (E, M) f32
                acc = term if acc is None else acc + term
            # NonLinearity2
            yy = acc + b2
            yy = jnp.maximum(yy, LRELU_SLOPE * yy)
            # LinearLayer3 (1x1, zero-init) + residual
            return x + mxu(w3, yy.astype(_BF16))

        # ---- stage 0: GenerativeBasis ----
        zt = take()[...]                # (D, B)   f32
        eb = take()[...]                # (B, M0)  f32 one-hot
        ep = take()[...]                # (16, M0) f32 one-hot
        w_lin = take()[...]             # (C0, D)  bf16
        basis = take()[...]             # (C0, 16) f32
        s_taps0 = take()                # (9, M0, M0) bf16

        s = mxu(w_lin, zt.astype(_BF16))                                  # (C0, B)
        x = (jnp.dot(s, eb, preferred_element_type=jnp.float32) *
             jnp.dot(basis, ep, preferred_element_type=jnp.float32))      # (C0, M0)

        for _ in range(n_blocks0):
            x = residual_block(x, s_taps0)

        # ---- upsampling stages ----
        for has_trans, n_blocks in up_stages:
            if has_trans:
                w_t = take()[...]                                         # (Cout, Cin)
                x = mxu(w_t, x.astype(_BF16))
            u = take()[...]                                               # (M_in, M_out)
            x = mxu(x.astype(_BF16), u)                                   # (C, M_out)
            s_ref = take()                                                # (9, M, M)
            for _ in range(n_blocks):
                x = residual_block(x, s_ref)

        # ---- head: fused Wall/Space/Open 1x1 convs + channel softmax + color map ----
        w_head = take()[...]            # (13, C_last) bf16
        cmap_t = take()[...]            # (3, 13)      f32
        logits = mxu(w_head, x.astype(_BF16))                             # (13, M)
        m = jnp.max(logits, axis=0, keepdims=True)
        e = jnp.exp(logits - m)
        probs = e / jnp.sum(e, axis=0, keepdims=True)
        out_ref[...] = jnp.dot(cmap_t, probs, preferred_element_type=jnp.float32)

        assert pos[0] == len(refs) - 1, "kernel arg plan mismatch"

    return kernel


# ------------------------------ forward wrapper ------------------------------

def generator_forward(params, z):
    B, _ = z.shape
    stage0 = params["stage0"]
    H = W = 4
    M = B * H * W

    args = [
        z.T,                            # (D, B)
        _batch_bcast(B, H * W),         # (B, M0)
        _pixel_bcast(H * W, B),         # (16, M0)
        stage0["w_lin"],                # (C0, D) bf16
        stage0["basis"],                # (C0, 16) f32
        _shift_matrices(B, H, W),       # (9, M0, M0) bf16
    ]
    for blk in stage0["blocks"]:
        args += [blk["w1"], blk["b1"], blk["w2"], blk["b2"], blk["w3"]]

    plan_up = []
    for st in params["up_stages"]:
        has_trans = st.get("w_trans") is not None
        if has_trans:
            args.append(st["w_trans"])
        args.append(_upsample_matrix(B, H, W))
        H, W = 2 * H, 2 * W
        M = B * H * W
        args.append(_shift_matrices(B, H, W))
        for blk in st["blocks"]:
            args += [blk["w1"], blk["b1"], blk["w2"], blk["b2"], blk["w3"]]
        plan_up.append((has_trans, len(st["blocks"])))

    args.append(params["w_head"])
    args.append(params["cmap_t"])

    plan = (len(stage0["blocks"]), tuple(plan_up))
    kernel = _make_fused_kernel(plan)

    rgb_flat = pl.pallas_call(
        kernel,
        out_shape=jax.ShapeDtypeStruct((3, M), jnp.float32),
        in_specs=[pl.BlockSpec(memory_space=pltpu.MemorySpace.VMEM) for _ in args],
        out_specs=pl.BlockSpec(memory_space=pltpu.MemorySpace.VMEM),
    )(*args)

    # (3, B*H*W) lane-dense kernel output -> NCHW like the PyTorch reference
    return rgb_flat.reshape(3, B, H, W).transpose(1, 0, 2, 3)


# ------------------------------ parameters ------------------------------

def _to_tap_weights(w_grouped, groups):
    """(Eout, Ein/G, 3, 3) grouped weight -> dense block-diagonal per-tap (9, Eout, Ein)."""
    w = np.asarray(jax.device_get(w_grouped), np.float32)
    e_out, cg, K, _ = w.shape
    eg = e_out // groups
    e_in = cg * groups
    dense = np.zeros((K * K, e_out, e_in), np.float32)
    for g in range(groups):
        ro = slice(g * eg, (g + 1) * eg)
        ci = slice(g * cg, (g + 1) * cg)
        for ky in range(K):
            for kx in range(K):
                dense[ky * K + kx, ro, ci] = w[ro, :, ky, kx]
    return jnp.asarray(dense, _BF16)


def init_generator_params(key, noise_dim, widths, cards, blocks, expansion, kernel_size=3):
    assert kernel_size == 3
    vsp = float(sum(blocks))
    act_gain = BA_GAIN * vsp ** (-1.0 / (2 * 3 - 2))
    key_iter = iter(jax.random.split(key, 256))

    def nk():
        return next(key_iter)

    def conv1x1_w(c_in, c_out, gain, dtype=_BF16):
        # PyTorch weight (Cout, Cin, 1, 1), MSR init std = gain / sqrt(Cin); kept as (Cout, Cin).
        if gain == 0.0:
            w = jnp.zeros((c_out, c_in), jnp.float32)
        else:
            std = gain / math.sqrt(c_in)
            w = std * jax.random.normal(nk(), (c_out, c_in), jnp.float32)
        return w.astype(dtype)

    def block_params(c, card):
        e = c * expansion
        cg = e // card
        std2 = act_gain / math.sqrt(cg * kernel_size * kernel_size)
        wg = std2 * jax.random.normal(nk(), (e, cg, kernel_size, kernel_size), jnp.float32)
        return {
            "w1": conv1x1_w(c, e, act_gain),
            "b1": jnp.zeros((e, 1), jnp.float32),
            "w2": _to_tap_weights(wg, card),
            "b2": jnp.zeros((e, 1), jnp.float32),
            "w3": conv1x1_w(e, c, 0.0),            # ActivationGain=0 -> zero-initialized
        }

    c0 = widths[0]
    stage0 = {
        "w_lin": ((1.0 / math.sqrt(noise_dim)) *
                  jax.random.normal(nk(), (c0, noise_dim), jnp.float32)).astype(_BF16),
        "basis": jax.random.normal(nk(), (c0, 16), jnp.float32),    # (C0, 4*4), N(0,1)
        "blocks": [block_params(c0, cards[0]) for _ in range(blocks[0])],
    }

    up_stages = []
    for s in range(1, len(widths)):
        c_in, c_out = widths[s - 1], widths[s]
        up_stages.append({
            "w_trans": conv1x1_w(c_in, c_out, 1.0) if c_in != c_out else None,
            "blocks": [block_params(c_out, cards[s]) for _ in range(blocks[s])],
        })

    c_last = widths[-1]
    w_head = jnp.concatenate(
        [conv1x1_w(c_last, 1, 1.0, jnp.float32),
         conv1x1_w(c_last, 10, 1.0, jnp.float32),
         conv1x1_w(c_last, 2, 1.0, jnp.float32)],
        axis=0,
    ).astype(_BF16)                                                  # (13, C_last)

    return {
        "stage0": stage0,
        "up_stages": up_stages,
        "w_head": w_head,
        "cmap_t": jnp.asarray(COLOR_MAP, jnp.float32).T,             # (3, 13)
    }


if __name__ == "__main__":
    key = jax.random.PRNGKey(0)
    pkey, zkey = jax.random.split(key)

    # Small config: Noise=32, WidthPerStage=[16, 8], CardinalityPerStage=[4, 2],
    # BlocksPerStage=[1, 1], ExpansionFactor=2, KernelSize=3, ResamplingFilter=[1,2,1]
    noise_dim = 32
    widths = [16, 8]
    cards = [4, 2]
    blocks = [1, 1]
    expansion = 2

    params = init_generator_params(pkey, noise_dim, widths, cards, blocks, expansion)
    z = jax.random.normal(zkey, (2, noise_dim), jnp.float32)

    fwd = jax.jit(generator_forward)
    rgb = fwd(params, z)
    jax.block_until_ready(rgb)

    assert rgb.shape == (2, 3, 8, 8), rgb.shape
    assert rgb.dtype == jnp.float32
    assert bool(jnp.all(jnp.isfinite(rgb)))
    print("KERNEL_OK")
</pallas_src>

<mosaic_0001>
module attributes {stable_mosaic.version = 11 : i64} {
  func.func @kernel(%arg0: memref<32x2xf32, #tpu.memory_space<vmem>>, %arg1: memref<2x32xf32, #tpu.memory_space<vmem>>, %arg2: memref<16x32xf32, #tpu.memory_space<vmem>>, %arg3: memref<16x32xbf16, #tpu.memory_space<vmem>>, %arg4: memref<16x16xf32, #tpu.memory_space<vmem>>, %arg5: memref<9x32x32xbf16, #tpu.memory_space<vmem>>, %arg6: memref<32x16xbf16, #tpu.memory_space<vmem>>, %arg7: memref<32x1xf32, #tpu.memory_space<vmem>>, %arg8: memref<9x32x32xbf16, #tpu.memory_space<vmem>>, %arg9: memref<32x1xf32, #tpu.memory_space<vmem>>, %arg10: memref<16x32xbf16, #tpu.memory_space<vmem>>, %arg11: memref<8x16xbf16, #tpu.memory_space<vmem>>, %arg12: memref<32x128xbf16, #tpu.memory_space<vmem>>, %arg13: memref<9x128x128xbf16, #tpu.memory_space<vmem>>, %arg14: memref<16x8xbf16, #tpu.memory_space<vmem>>, %arg15: memref<16x1xf32, #tpu.memory_space<vmem>>, %arg16: memref<9x16x16xbf16, #tpu.memory_space<vmem>>, %arg17: memref<16x1xf32, #tpu.memory_space<vmem>>, %arg18: memref<8x16xbf16, #tpu.memory_space<vmem>>, %arg19: memref<13x8xbf16, #tpu.memory_space<vmem>>, %arg20: memref<3x13xf32, #tpu.memory_space<vmem>>, %arg21: memref<3x128xf32, #tpu.memory_space<vmem>>) attributes {dimension_semantics = [], scalar_prefetch = 0 : i64, scratch_operands = 0 : i64, tpu.core_type = #tpu.core_type<tc>} {
    %c0 = arith.constant 0 : index
    %c0_0 = arith.constant 0 : index
    %0 = vector.load %arg0[%c0, %c0_0] : memref<32x2xf32, #tpu.memory_space<vmem>>, vector<32x2xf32>
    %c0_1 = arith.constant 0 : index
    %c0_2 = arith.constant 0 : index
    %1 = vector.load %arg1[%c0_1, %c0_2] : memref<2x32xf32, #tpu.memory_space<vmem>>, vector<2x32xf32>
    %c0_3 = arith.constant 0 : index
    %c0_4 = arith.constant 0 : index
    %2 = vector.load %arg2[%c0_3, %c0_4] : memref<16x32xf32, #tpu.memory_space<vmem>>, vector<16x32xf32>
    %c0_5 = arith.constant 0 : index
    %c0_6 = arith.constant 0 : index
    %3 = vector.load %arg3[%c0_5, %c0_6] : memref<16x32xbf16, #tpu.memory_space<vmem>>, vector<16x32xbf16>
    %c0_7 = arith.constant 0 : index
    %c0_8 = arith.constant 0 : index
    %4 = vector.load %arg4[%c0_7, %c0_8] : memref<16x16xf32, #tpu.memory_space<vmem>>, vector<16x16xf32>
    %5 = arith.truncf %0 : vector<32x2xf32> to vector<32x2xbf16>
    %cst = arith.constant dense<0.000000e+00> : vector<16x2xf32>
    %6 = tpu.matmul %3, %5, %cst {dimension_numbers = #tpu.dot_dimension_numbers<[1], [0], [0], [1], [0, 0, 1, 1], [], []>} : vector<16x32xbf16>, vector<32x2xbf16>, vector<16x2xf32> -> vector<16x2xf32>
    %cst_9 = arith.constant dense<0.000000e+00> : vector<16x32xf32>
    %7 = tpu.matmul %6, %1, %cst_9 {dimension_numbers = #tpu.dot_dimension_numbers<[1], [0], [0], [1], [0, 0, 1, 1], [], []>} : vector<16x2xf32>, vector<2x32xf32>, vector<16x32xf32> -> vector<16x32xf32>
    %cst_10 = arith.constant dense<0.000000e+00> : vector<16x32xf32>
    %8 = tpu.matmul %4, %2, %cst_10 {dimension_numbers = #tpu.dot_dimension_numbers<[1], [0], [0], [1], [0, 0, 1, 1], [], []>} : vector<16x16xf32>, vector<16x32xf32>, vector<16x32xf32> -> vector<16x32xf32>
    %9 = arith.mulf %7, %8 : vector<16x32xf32>
    %c0_11 = arith.constant 0 : index
    %c0_12 = arith.constant 0 : index
    %10 = vector.load %arg6[%c0_11, %c0_12] : memref<32x16xbf16, #tpu.memory_space<vmem>>, vector<32x16xbf16>
    %c0_13 = arith.constant 0 : index
    %c0_14 = arith.constant 0 : index
    %11 = vector.load %arg7[%c0_13, %c0_14] : memref<32x1xf32, #tpu.memory_space<vmem>>, vector<32x1xf32>
    %c0_15 = arith.constant 0 : index
    %c0_16 = arith.constant 0 : index
    %12 = vector.load %arg9[%c0_15, %c0_16] : memref<32x1xf32, #tpu.memory_space<vmem>>, vector<32x1xf32>
    %c0_17 = arith.constant 0 : index
    %c0_18 = arith.constant 0 : index
    %13 = vector.load %arg10[%c0_17, %c0_18] : memref<16x32xbf16, #tpu.memory_space<vmem>>, vector<16x32xbf16>
    %14 = arith.truncf %9 : vector<16x32xf32> to vector<16x32xbf16>
    %cst_19 = arith.constant dense<0.000000e+00> : vector<32x32xf32>
    %15 = tpu.matmul %10, %14, %cst_19 {dimension_numbers = #tpu.dot_dimension_numbers<[1], [0], [0], [1], [0, 0, 1, 1], [], []>} : vector<32x16xbf16>, vector<16x32xbf16>, vector<32x32xf32> -> vector<32x32xf32>
    %16 = vector.broadcast %11 : vector<32x1xf32> to vector<32x32xf32>
    %17 = arith.addf %15, %16 : vector<32x32xf32>
    %cst_20 = arith.constant 2.000000e-01 : f32
    %18 = vector.broadcast %cst_20 : f32 to vector<32x32xf32>
    %19 = arith.mulf %18, %17 : vector<32x32xf32>
    %20 = arith.maximumf %17, %19 : vector<32x32xf32>
    %21 = arith.truncf %20 : vector<32x32xf32> to vector<32x32xbf16>
    %c0_21 = arith.constant 0 : index
    %c0_22 = arith.constant 0 : index
    %c0_23 = arith.constant 0 : index
    %22 = vector.load %arg5[%c0_21, %c0_22, %c0_23] : memref<9x32x32xbf16, #tpu.memory_space<vmem>>, vector<1x32x32xbf16>
    %23 = vector.shape_cast %22 : vector<1x32x32xbf16> to vector<32x32xbf16>
    %cst_24 = arith.constant dense<0.000000e+00> : vector<32x32xf32>
    %24 = tpu.matmul %21, %23, %cst_24 {dimension_numbers = #tpu.dot_dimension_numbers<[1], [0], [0], [1], [0, 0, 1, 1], [], []>} : vector<32x32xbf16>, vector<32x32xbf16>, vector<32x32xf32> -> vector<32x32xf32>
    %c0_25 = arith.constant 0 : index
    %c0_26 = arith.constant 0 : index
    %c0_27 = arith.constant 0 : index
    %25 = vector.load %arg8[%c0_25, %c0_26, %c0_27] : memref<9x32x32xbf16, #tpu.memory_space<vmem>>, vector<1x32x32xbf16>
    %26 = vector.shape_cast %25 : vector<1x32x32xbf16> to vector<32x32xbf16>
    %27 = arith.truncf %24 : vector<32x32xf32> to vector<32x32xbf16>
    %cst_28 = arith.constant dense<0.000000e+00> : vector<32x32xf32>
    %28 = tpu.matmul %26, %27, %cst_28 {dimension_numbers = #tpu.dot_dimension_numbers<[1], [0], [0], [1], [0, 0, 1, 1], [], []>} : vector<32x32xbf16>, vector<32x32xbf16>, vector<32x32xf32> -> vector<32x32xf32>
    %c1 = arith.constant 1 : index
    %c0_29 = arith.constant 0 : index
    %c0_30 = arith.constant 0 : index
    %29 = vector.load %arg5[%c1, %c0_29, %c0_30] : memref<9x32x32xbf16, #tpu.memory_space<vmem>>, vector<1x32x32xbf16>
    %30 = vector.shape_cast %29 : vector<1x32x32xbf16> to vector<32x32xbf16>
    %cst_31 = arith.constant dense<0.000000e+00> : vector<32x32xf32>
    %31 = tpu.matmul %21, %30, %cst_31 {dimension_numbers = #tpu.dot_dimension_numbers<[1], [0], [0], [1], [0, 0, 1, 1], [], []>} : vector<32x32xbf16>, vector<32x32xbf16>, vector<32x32xf32> -> vector<32x32xf32>
    %c1_32 = arith.constant 1 : index
    %c0_33 = arith.constant 0 : index
    %c0_34 = arith.constant 0 : index
    %32 = vector.load %arg8[%c1_32, %c0_33, %c0_34] : memref<9x32x32xbf16, #tpu.memory_space<vmem>>, vector<1x32x32xbf16>
    %33 = vector.shape_cast %32 : vector<1x32x32xbf16> to vector<32x32xbf16>
    %34 = arith.truncf %31 : vector<32x32xf32> to vector<32x32xbf16>
    %cst_35 = arith.constant dense<0.000000e+00> : vector<32x32xf32>
    %35 = tpu.matmul %33, %34, %cst_35 {dimension_numbers = #tpu.dot_dimension_numbers<[1], [0], [0], [1], [0, 0, 1, 1], [], []>} : vector<32x32xbf16>, vector<32x32xbf16>, vector<32x32xf32> -> vector<32x32xf32>
    %36 = arith.addf %28, %35 : vector<32x32xf32>
    %c2 = arith.constant 2 : index
    %c0_36 = arith.constant 0 : index
    %c0_37 = arith.constant 0 : index
    %37 = vector.load %arg5[%c2, %c0_36, %c0_37] : memref<9x32x32xbf16, #tpu.memory_space<vmem>>, vector<1x32x32xbf16>
    %38 = vector.shape_cast %37 : vector<1x32x32xbf16> to vector<32x32xbf16>
    %cst_38 = arith.constant dense<0.000000e+00> : vector<32x32xf32>
    %39 = tpu.matmul %21, %38, %cst_38 {dimension_numbers = #tpu.dot_dimension_numbers<[1], [0], [0], [1], [0, 0, 1, 1], [], []>} : vector<32x32xbf16>, vector<32x32xbf16>, vector<32x32xf32> -> vector<32x32xf32>
    %c2_39 = arith.constant 2 : index
    %c0_40 = arith.constant 0 : index
    %c0_41 = arith.constant 0 : index
    %40 = vector.load %arg8[%c2_39, %c0_40, %c0_41] : memref<9x32x32xbf16, #tpu.memory_space<vmem>>, vector<1x32x32xbf16>
    %41 = vector.shape_cast %40 : vector<1x32x32xbf16> to vector<32x32xbf16>
    %42 = arith.truncf %39 : vector<32x32xf32> to vector<32x32xbf16>
    %cst_42 = arith.constant dense<0.000000e+00> : vector<32x32xf32>
    %43 = tpu.matmul %41, %42, %cst_42 {dimension_numbers = #tpu.dot_dimension_numbers<[1], [0], [0], [1], [0, 0, 1, 1], [], []>} : vector<32x32xbf16>, vector<32x32xbf16>, vector<32x32xf32> -> vector<32x32xf32>
    %44 = arith.addf %36, %43 : vector<32x32xf32>
    %c3 = arith.constant 3 : index
    %c0_43 = arith.constant 0 : index
    %c0_44 = arith.constant 0 : index
    %45 = vector.load %arg5[%c3, %c0_43, %c0_44] : memref<9x32x32xbf16, #tpu.memory_space<vmem>>, vector<1x32x32xbf16>
    %46 = vector.shape_cast %45 : vector<1x32x32xbf16> to vector<32x32xbf16>
    %cst_45 = arith.constant dense<0.000000e+00> : vector<32x32xf32>
    %47 = tpu.matmul %21, %46, %cst_45 {dimension_numbers = #tpu.dot_dimension_numbers<[1], [0], [0], [1], [0, 0, 1, 1], [], []>} : vector<32x32xbf16>, vector<32x32xbf16>, vector<32x32xf32> -> vector<32x32xf32>
    %c3_46 = arith.constant 3 : index
    %c0_47 = arith.constant 0 : index
    %c0_48 = arith.constant 0 : index
    %48 = vector.load %arg8[%c3_46, %c0_47, %c0_48] : memref<9x32x32xbf16, #tpu.memory_space<vmem>>, vector<1x32x32xbf16>
    %49 = vector.shape_cast %48 : vector<1x32x32xbf16> to vector<32x32xbf16>
    %50 = arith.truncf %47 : vector<32x32xf32> to vector<32x32xbf16>
    %cst_49 = arith.constant dense<0.000000e+00> : vector<32x32xf32>
    %51 = tpu.matmul %49, %50, %cst_49 {dimension_numbers = #tpu.dot_dimension_numbers<[1], [0], [0], [1], [0, 0, 1, 1], [], []>} : vector<32x32xbf16>, vector<32x32xbf16>, vector<32x32xf32> -> vector<32x32xf32>
    %52 = arith.addf %44, %51 : vector<32x32xf32>
    %c4 = arith.constant 4 : index
    %c0_50 = arith.constant 0 : index
    %c0_51 = arith.constant 0 : index
    %53 = vector.load %arg5[%c4, %c0_50, %c0_51] : memref<9x32x32xbf16, #tpu.memory_space<vmem>>, vector<1x32x32xbf16>
    %54 = vector.shape_cast %53 : vector<1x32x32xbf16> to vector<32x32xbf16>
    %cst_52 = arith.constant dense<0.000000e+00> : vector<32x32xf32>
    %55 = tpu.matmul %21, %54, %cst_52 {dimension_numbers = #tpu.dot_dimension_numbers<[1], [0], [0], [1], [0, 0, 1, 1], [], []>} : vector<32x32xbf16>, vector<32x32xbf16>, vector<32x32xf32> -> vector<32x32xf32>
    %c4_53 = arith.constant 4 : index
    %c0_54 = arith.constant 0 : index
    %c0_55 = arith.constant 0 : index
    %56 = vector.load %arg8[%c4_53, %c0_54, %c0_55] : memref<9x32x32xbf16, #tpu.memory_space<vmem>>, vector<1x32x32xbf16>
    %57 = vector.shape_cast %56 : vector<1x32x32xbf16> to vector<32x32xbf16>
    %58 = arith.truncf %55 : vector<32x32xf32> to vector<32x32xbf16>
    %cst_56 = arith.constant dense<0.000000e+00> : vector<32x32xf32>
    %59 = tpu.matmul %57, %58, %cst_56 {dimension_numbers = #tpu.dot_dimension_numbers<[1], [0], [0], [1], [0, 0, 1, 1], [], []>} : vector<32x32xbf16>, vector<32x32xbf16>, vector<32x32xf32> -> vector<32x32xf32>
    %60 = arith.addf %52, %59 : vector<32x32xf32>
    %c5 = arith.constant 5 : index
    %c0_57 = arith.constant 0 : index
    %c0_58 = arith.constant 0 : index
    %61 = vector.load %arg5[%c5, %c0_57, %c0_58] : memref<9x32x32xbf16, #tpu.memory_space<vmem>>, vector<1x32x32xbf16>
    %62 = vector.shape_cast %61 : vector<1x32x32xbf16> to vector<32x32xbf16>
    %cst_59 = arith.constant dense<0.000000e+00> : vector<32x32xf32>
    %63 = tpu.matmul %21, %62, %cst_59 {dimension_numbers = #tpu.dot_dimension_numbers<[1], [0], [0], [1], [0, 0, 1, 1], [], []>} : vector<32x32xbf16>, vector<32x32xbf16>, vector<32x32xf32> -> vector<32x32xf32>
    %c5_60 = arith.constant 5 : index
    %c0_61 = arith.constant 0 : index
    %c0_62 = arith.constant 0 : index
    %64 = vector.load %arg8[%c5_60, %c0_61, %c0_62] : memref<9x32x32xbf16, #tpu.memory_space<vmem>>, vector<1x32x32xbf16>
    %65 = vector.shape_cast %64 : vector<1x32x32xbf16> to vector<32x32xbf16>
    %66 = arith.truncf %63 : vector<32x32xf32> to vector<32x32xbf16>
    %cst_63 = arith.constant dense<0.000000e+00> : vector<32x32xf32>
    %67 = tpu.matmul %65, %66, %cst_63 {dimension_numbers = #tpu.dot_dimension_numbers<[1], [0], [0], [1], [0, 0, 1, 1], [], []>} : vector<32x32xbf16>, vector<32x32xbf16>, vector<32x32xf32> -> vector<32x32xf32>
    %68 = arith.addf %60, %67 : vector<32x32xf32>
    %c6 = arith.constant 6 : index
    %c0_64 = arith.constant 0 : index
    %c0_65 = arith.constant 0 : index
    %69 = vector.load %arg5[%c6, %c0_64, %c0_65] : memref<9x32x32xbf16, #tpu.memory_space<vmem>>, vector<1x32x32xbf16>
    %70 = vector.shape_cast %69 : vector<1x32x32xbf16> to vector<32x32xbf16>
    %cst_66 = arith.constant dense<0.000000e+00> : vector<32x32xf32>
    %71 = tpu.matmul %21, %70, %cst_66 {dimension_numbers = #tpu.dot_dimension_numbers<[1], [0], [0], [1], [0, 0, 1, 1], [], []>} : vector<32x32xbf16>, vector<32x32xbf16>, vector<32x32xf32> -> vector<32x32xf32>
    %c6_67 = arith.constant 6 : index
    %c0_68 = arith.constant 0 : index
    %c0_69 = arith.constant 0 : index
    %72 = vector.load %arg8[%c6_67, %c0_68, %c0_69] : memref<9x32x32xbf16, #tpu.memory_space<vmem>>, vector<1x32x32xbf16>
    %73 = vector.shape_cast %72 : vector<1x32x32xbf16> to vector<32x32xbf16>
    %74 = arith.truncf %71 : vector<32x32xf32> to vector<32x32xbf16>
    %cst_70 = arith.constant dense<0.000000e+00> : vector<32x32xf32>
    %75 = tpu.matmul %73, %74, %cst_70 {dimension_numbers = #tpu.dot_dimension_numbers<[1], [0], [0], [1], [0, 0, 1, 1], [], []>} : vector<32x32xbf16>, vector<32x32xbf16>, vector<32x32xf32> -> vector<32x32xf32>
    %76 = arith.addf %68, %75 : vector<32x32xf32>
    %c7 = arith.constant 7 : index
    %c0_71 = arith.constant 0 : index
    %c0_72 = arith.constant 0 : index
    %77 = vector.load %arg5[%c7, %c0_71, %c0_72] : memref<9x32x32xbf16, #tpu.memory_space<vmem>>, vector<1x32x32xbf16>
    %78 = vector.shape_cast %77 : vector<1x32x32xbf16> to vector<32x32xbf16>
    %cst_73 = arith.constant dense<0.000000e+00> : vector<32x32xf32>
    %79 = tpu.matmul %21, %78, %cst_73 {dimension_numbers = #tpu.dot_dimension_numbers<[1], [0], [0], [1], [0, 0, 1, 1], [], []>} : vector<32x32xbf16>, vector<32x32xbf16>, vector<32x32xf32> -> vector<32x32xf32>
    %c7_74 = arith.constant 7 : index
    %c0_75 = arith.constant 0 : index
    %c0_76 = arith.constant 0 : index
    %80 = vector.load %arg8[%c7_74, %c0_75, %c0_76] : memref<9x32x32xbf16, #tpu.memory_space<vmem>>, vector<1x32x32xbf16>
    %81 = vector.shape_cast %80 : vector<1x32x32xbf16> to vector<32x32xbf16>
    %82 = arith.truncf %79 : vector<32x32xf32> to vector<32x32xbf16>
    %cst_77 = arith.constant dense<0.000000e+00> : vector<32x32xf32>
    %83 = tpu.matmul %81, %82, %cst_77 {dimension_numbers = #tpu.dot_dimension_numbers<[1], [0], [0], [1], [0, 0, 1, 1], [], []>} : vector<32x32xbf16>, vector<32x32xbf16>, vector<32x32xf32> -> vector<32x32xf32>
    %84 = arith.addf %76, %83 : vector<32x32xf32>
    %c8 = arith.constant 8 : index
    %c0_78 = arith.constant 0 : index
    %c0_79 = arith.constant 0 : index
    %85 = vector.load %arg5[%c8, %c0_78, %c0_79] : memref<9x32x32xbf16, #tpu.memory_space<vmem>>, vector<1x32x32xbf16>
    %86 = vector.shape_cast %85 : vector<1x32x32xbf16> to vector<32x32xbf16>
    %cst_80 = arith.constant dense<0.000000e+00> : vector<32x32xf32>
    %87 = tpu.matmul %21, %86, %cst_80 {dimension_numbers = #tpu.dot_dimension_numbers<[1], [0], [0], [1], [0, 0, 1, 1], [], []>} : vector<32x32xbf16>, vector<32x32xbf16>, vector<32x32xf32> -> vector<32x32xf32>
    %c8_81 = arith.constant 8 : index
    %c0_82 = arith.constant 0 : index
    %c0_83 = arith.constant 0 : index
    %88 = vector.load %arg8[%c8_81, %c0_82, %c0_83] : memref<9x32x32xbf16, #tpu.memory_space<vmem>>, vector<1x32x32xbf16>
    %89 = vector.shape_cast %88 : vector<1x32x32xbf16> to vector<32x32xbf16>
    %90 = arith.truncf %87 : vector<32x32xf32> to vector<32x32xbf16>
    %cst_84 = arith.constant dense<0.000000e+00> : vector<32x32xf32>
    %91 = tpu.matmul %89, %90, %cst_84 {dimension_numbers = #tpu.dot_dimension_numbers<[1], [0], [0], [1], [0, 0, 1, 1], [], []>} : vector<32x32xbf16>, vector<32x32xbf16>, vector<32x32xf32> -> vector<32x32xf32>
    %92 = arith.addf %84, %91 : vector<32x32xf32>
    %93 = vector.broadcast %12 : vector<32x1xf32> to vector<32x32xf32>
    %94 = arith.addf %92, %93 : vector<32x32xf32>
    %cst_85 = arith.constant 2.000000e-01 : f32
    %95 = vector.broadcast %cst_85 : f32 to vector<32x32xf32>
    %96 = arith.mulf %95, %94 : vector<32x32xf32>
    %97 = arith.maximumf %94, %96 : vector<32x32xf32>
    %98 = arith.truncf %97 : vector<32x32xf32> to vector<32x32xbf16>
    %cst_86 = arith.constant dense<0.000000e+00> : vector<16x32xf32>
    %99 = tpu.matmul %13, %98, %cst_86 {dimension_numbers = #tpu.dot_dimension_numbers<[1], [0], [0], [1], [0, 0, 1, 1], [], []>} : vector<16x32xbf16>, vector<32x32xbf16>, vector<16x32xf32> -> vector<16x32xf32>
    %100 = arith.addf %9, %99 : vector<16x32xf32>
    %c0_87 = arith.constant 0 : index
    %c0_88 = arith.constant 0 : index
    %101 = vector.load %arg11[%c0_87, %c0_88] : memref<8x16xbf16, #tpu.memory_space<vmem>>, vector<8x16xbf16>
    %102 = arith.truncf %100 : vector<16x32xf32> to vector<16x32xbf16>
    %cst_89 = arith.constant dense<0.000000e+00> : vector<8x32xf32>
    %103 = tpu.matmul %101, %102, %cst_89 {dimension_numbers = #tpu.dot_dimension_numbers<[1], [0], [0], [1], [0, 0, 1, 1], [], []>} : vector<8x16xbf16>, vector<16x32xbf16>, vector<8x32xf32> -> vector<8x32xf32>
    %c0_90 = arith.constant 0 : index
    %c0_91 = arith.constant 0 : index
    %104 = vector.load %arg12[%c0_90, %c0_91] : memref<32x128xbf16, #tpu.memory_space<vmem>>, vector<32x128xbf16>
    %105 = arith.truncf %103 : vector<8x32xf32> to vector<8x32xbf16>
    %cst_92 = arith.constant dense<0.000000e+00> : vector<8x128xf32>
    %106 = tpu.matmul %105, %104, %cst_92 {dimension_numbers = #tpu.dot_dimension_numbers<[1], [0], [0], [1], [0, 0, 1, 1], [], []>} : vector<8x32xbf16>, vector<32x128xbf16>, vector<8x128xf32> -> vector<8x128xf32>
    %c0_93 = arith.constant 0 : index
    %c0_94 = arith.constant 0 : index
    %107 = vector.load %arg14[%c0_93, %c0_94] : memref<16x8xbf16, #tpu.memory_space<vmem>>, vector<16x8xbf16>
    %c0_95 = arith.constant 0 : index
    %c0_96 = arith.constant 0 : index
    %108 = vector.load %arg15[%c0_95, %c0_96] : memref<16x1xf32, #tpu.memory_space<vmem>>, vector<16x1xf32>
    %c0_97 = arith.constant 0 : index
    %c0_98 = arith.constant 0 : index
    %109 = vector.load %arg17[%c0_97, %c0_98] : memref<16x1xf32, #tpu.memory_space<vmem>>, vector<16x1xf32>
    %c0_99 = arith.constant 0 : index
    %c0_100 = arith.constant 0 : index
    %110 = vector.load %arg18[%c0_99, %c0_100] : memref<8x16xbf16, #tpu.memory_space<vmem>>, vector<8x16xbf16>
    %111 = arith.truncf %106 : vector<8x128xf32> to vector<8x128xbf16>
    %cst_101 = arith.constant dense<0.000000e+00> : vector<16x128xf32>
    %112 = tpu.matmul %107, %111, %cst_101 {dimension_numbers = #tpu.dot_dimension_numbers<[1], [0], [0], [1], [0, 0, 1, 1], [], []>} : vector<16x8xbf16>, vector<8x128xbf16>, vector<16x128xf32> -> vector<16x128xf32>
    %113 = vector.broadcast %108 : vector<16x1xf32> to vector<16x128xf32>
    %114 = arith.addf %112, %113 : vector<16x128xf32>
    %cst_102 = arith.constant 2.000000e-01 : f32
    %115 = vector.broadcast %cst_102 : f32 to vector<16x128xf32>
    %116 = arith.mulf %115, %114 : vector<16x128xf32>
    %117 = arith.maximumf %114, %116 : vector<16x128xf32>
    %118 = arith.truncf %117 : vector<16x128xf32> to vector<16x128xbf16>
    %c0_103 = arith.constant 0 : index
    %c0_104 = arith.constant 0 : index
    %c0_105 = arith.constant 0 : index
    %119 = vector.load %arg13[%c0_103, %c0_104, %c0_105] : memref<9x128x128xbf16, #tpu.memory_space<vmem>>, vector<1x128x128xbf16>
    %120 = vector.shape_cast %119 : vector<1x128x128xbf16> to vector<128x128xbf16>
    %cst_106 = arith.constant dense<0.000000e+00> : vector<16x128xf32>
    %121 = tpu.matmul %118, %120, %cst_106 {dimension_numbers = #tpu.dot_dimension_numbers<[1], [0], [0], [1], [0, 0, 1, 1], [], []>} : vector<16x128xbf16>, vector<128x128xbf16>, vector<16x128xf32> -> vector<16x128xf32>
    %c0_107 = arith.constant 0 : index
    %c0_108 = arith.constant 0 : index
    %c0_109 = arith.constant 0 : index
    %122 = vector.load %arg16[%c0_107, %c0_108, %c0_109] : memref<9x16x16xbf16, #tpu.memory_space<vmem>>, vector<1x16x16xbf16>
    %123 = vector.shape_cast %122 : vector<1x16x16xbf16> to vector<16x16xbf16>
    %124 = arith.truncf %121 : vector<16x128xf32> to vector<16x128xbf16>
    %cst_110 = arith.constant dense<0.000000e+00> : vector<16x128xf32>
    %125 = tpu.matmul %123, %124, %cst_110 {dimension_numbers = #tpu.dot_dimension_numbers<[1], [0], [0], [1], [0, 0, 1, 1], [], []>} : vector<16x16xbf16>, vector<16x128xbf16>, vector<16x128xf32> -> vector<16x128xf32>
    %c1_111 = arith.constant 1 : index
    %c0_112 = arith.constant 0 : index
    %c0_113 = arith.constant 0 : index
    %126 = vector.load %arg13[%c1_111, %c0_112, %c0_113] : memref<9x128x128xbf16, #tpu.memory_space<vmem>>, vector<1x128x128xbf16>
    %127 = vector.shape_cast %126 : vector<1x128x128xbf16> to vector<128x128xbf16>
    %cst_114 = arith.constant dense<0.000000e+00> : vector<16x128xf32>
    %128 = tpu.matmul %118, %127, %cst_114 {dimension_numbers = #tpu.dot_dimension_numbers<[1], [0], [0], [1], [0, 0, 1, 1], [], []>} : vector<16x128xbf16>, vector<128x128xbf16>, vector<16x128xf32> -> vector<16x128xf32>
    %c1_115 = arith.constant 1 : index
    %c0_116 = arith.constant 0 : index
    %c0_117 = arith.constant 0 : index
    %129 = vector.load %arg16[%c1_115, %c0_116, %c0_117] : memref<9x16x16xbf16, #tpu.memory_space<vmem>>, vector<1x16x16xbf16>
    %130 = vector.shape_cast %129 : vector<1x16x16xbf16> to vector<16x16xbf16>
    %131 = arith.truncf %128 : vector<16x128xf32> to vector<16x128xbf16>
    %cst_118 = arith.constant dense<0.000000e+00> : vector<16x128xf32>
    %132 = tpu.matmul %130, %131, %cst_118 {dimension_numbers = #tpu.dot_dimension_numbers<[1], [0], [0], [1], [0, 0, 1, 1], [], []>} : vector<16x16xbf16>, vector<16x128xbf16>, vector<16x128xf32> -> vector<16x128xf32>
    %133 = arith.addf %125, %132 : vector<16x128xf32>
    %c2_119 = arith.constant 2 : index
    %c0_120 = arith.constant 0 : index
    %c0_121 = arith.constant 0 : index
    %134 = vector.load %arg13[%c2_119, %c0_120, %c0_121] : memref<9x128x128xbf16, #tpu.memory_space<vmem>>, vector<1x128x128xbf16>
    %135 = vector.shape_cast %134 : vector<1x128x128xbf16> to vector<128x128xbf16>
    %cst_122 = arith.constant dense<0.000000e+00> : vector<16x128xf32>
    %136 = tpu.matmul %118, %135, %cst_122 {dimension_numbers = #tpu.dot_dimension_numbers<[1], [0], [0], [1], [0, 0, 1, 1], [], []>} : vector<16x128xbf16>, vector<128x128xbf16>, vector<16x128xf32> -> vector<16x128xf32>
    %c2_123 = arith.constant 2 : index
    %c0_124 = arith.constant 0 : index
    %c0_125 = arith.constant 0 : index
    %137 = vector.load %arg16[%c2_123, %c0_124, %c0_125] : memref<9x16x16xbf16, #tpu.memory_space<vmem>>, vector<1x16x16xbf16>
    %138 = vector.shape_cast %137 : vector<1x16x16xbf16> to vector<16x16xbf16>
    %139 = arith.truncf %136 : vector<16x128xf32> to vector<16x128xbf16>
    %cst_126 = arith.constant dense<0.000000e+00> : vector<16x128xf32>
    %140 = tpu.matmul %138, %139, %cst_126 {dimension_numbers = #tpu.dot_dimension_numbers<[1], [0], [0], [1], [0, 0, 1, 1], [], []>} : vector<16x16xbf16>, vector<16x128xbf16>, vector<16x128xf32> -> vector<16x128xf32>
    %141 = arith.addf %133, %140 : vector<16x128xf32>
    %c3_127 = arith.constant 3 : index
    %c0_128 = arith.constant 0 : index
    %c0_129 = arith.constant 0 : index
    %142 = vector.load %arg13[%c3_127, %c0_128, %c0_129] : memref<9x128x128xbf16, #tpu.memory_space<vmem>>, vector<1x128x128xbf16>
    %143 = vector.shape_cast %142 : vector<1x128x128xbf16> to vector<128x128xbf16>
    %cst_130 = arith.constant dense<0.000000e+00> : vector<16x128xf32>
    %144 = tpu.matmul %118, %143, %cst_130 {dimension_numbers = #tpu.dot_dimension_numbers<[1], [0], [0], [1], [0, 0, 1, 1], [], []>} : vector<16x128xbf16>, vector<128x128xbf16>, vector<16x128xf32> -> vector<16x128xf32>
    %c3_131 = arith.constant 3 : index
    %c0_132 = arith.constant 0 : index
    %c0_133 = arith.constant 0 : index
    %145 = vector.load %arg16[%c3_131, %c0_132, %c0_133] : memref<9x16x16xbf16, #tpu.memory_space<vmem>>, vector<1x16x16xbf16>
    %146 = vector.shape_cast %145 : vector<1x16x16xbf16> to vector<16x16xbf16>
    %147 = arith.truncf %144 : vector<16x128xf32> to vector<16x128xbf16>
    %cst_134 = arith.constant dense<0.000000e+00> : vector<16x128xf32>
    %148 = tpu.matmul %146, %147, %cst_134 {dimension_numbers = #tpu.dot_dimension_numbers<[1], [0], [0], [1], [0, 0, 1, 1], [], []>} : vector<16x16xbf16>, vector<16x128xbf16>, vector<16x128xf32> -> vector<16x128xf32>
    %149 = arith.addf %141, %148 : vector<16x128xf32>
    %c4_135 = arith.constant 4 : index
    %c0_136 = arith.constant 0 : index
    %c0_137 = arith.constant 0 : index
    %150 = vector.load %arg13[%c4_135, %c0_136, %c0_137] : memref<9x128x128xbf16, #tpu.memory_space<vmem>>, vector<1x128x128xbf16>
    %151 = vector.shape_cast %150 : vector<1x128x128xbf16> to vector<128x128xbf16>
    %cst_138 = arith.constant dense<0.000000e+00> : vector<16x128xf32>
    %152 = tpu.matmul %118, %151, %cst_138 {dimension_numbers = #tpu.dot_dimension_numbers<[1], [0], [0], [1], [0, 0, 1, 1], [], []>} : vector<16x128xbf16>, vector<128x128xbf16>, vector<16x128xf32> -> vector<16x128xf32>
    %c4_139 = arith.constant 4 : index
    %c0_140 = arith.constant 0 : index
    %c0_141 = arith.constant 0 : index
    %153 = vector.load %arg16[%c4_139, %c0_140, %c0_141] : memref<9x16x16xbf16, #tpu.memory_space<vmem>>, vector<1x16x16xbf16>
    %154 = vector.shape_cast %153 : vector<1x16x16xbf16> to vector<16x16xbf16>
    %155 = arith.truncf %152 : vector<16x128xf32> to vector<16x128xbf16>
    %cst_142 = arith.constant dense<0.000000e+00> : vector<16x128xf32>
    %156 = tpu.matmul %154, %155, %cst_142 {dimension_numbers = #tpu.dot_dimension_numbers<[1], [0], [0], [1], [0, 0, 1, 1], [], []>} : vector<16x16xbf16>, vector<16x128xbf16>, vector<16x128xf32> -> vector<16x128xf32>
    %157 = arith.addf %149, %156 : vector<16x128xf32>
    %c5_143 = arith.constant 5 : index
    %c0_144 = arith.constant 0 : index
    %c0_145 = arith.constant 0 : index
    %158 = vector.load %arg13[%c5_143, %c0_144, %c0_145] : memref<9x128x128xbf16, #tpu.memory_space<vmem>>, vector<1x128x128xbf16>
    %159 = vector.shape_cast %158 : vector<1x128x128xbf16> to vector<128x128xbf16>
    %cst_146 = arith.constant dense<0.000000e+00> : vector<16x128xf32>
    %160 = tpu.matmul %118, %159, %cst_146 {dimension_numbers = #tpu.dot_dimension_numbers<[1], [0], [0], [1], [0, 0, 1, 1], [], []>} : vector<16x128xbf16>, vector<128x128xbf16>, vector<16x128xf32> -> vector<16x128xf32>
    %c5_147 = arith.constant 5 : index
    %c0_148 = arith.constant 0 : index
    %c0_149 = arith.constant 0 : index
    %161 = vector.load %arg16[%c5_147, %c0_148, %c0_149] : memref<9x16x16xbf16, #tpu.memory_space<vmem>>, vector<1x16x16xbf16>
    %162 = vector.shape_cast %161 : vector<1x16x16xbf16> to vector<16x16xbf16>
    %163 = arith.truncf %160 : vector<16x128xf32> to vector<16x128xbf16>
    %cst_150 = arith.constant dense<0.000000e+00> : vector<16x128xf32>
    %164 = tpu.matmul %162, %163, %cst_150 {dimension_numbers = #tpu.dot_dimension_numbers<[1], [0], [0], [1], [0, 0, 1, 1], [], []>} : vector<16x16xbf16>, vector<16x128xbf16>, vector<16x128xf32> -> vector<16x128xf32>
    %165 = arith.addf %157, %164 : vector<16x128xf32>
    %c6_151 = arith.constant 6 : index
    %c0_152 = arith.constant 0 : index
    %c0_153 = arith.constant 0 : index
    %166 = vector.load %arg13[%c6_151, %c0_152, %c0_153] : memref<9x128x128xbf16, #tpu.memory_space<vmem>>, vector<1x128x128xbf16>
    %167 = vector.shape_cast %166 : vector<1x128x128xbf16> to vector<128x128xbf16>
    %cst_154 = arith.constant dense<0.000000e+00> : vector<16x128xf32>
    %168 = tpu.matmul %118, %167, %cst_154 {dimension_numbers = #tpu.dot_dimension_numbers<[1], [0], [0], [1], [0, 0, 1, 1], [], []>} : vector<16x128xbf16>, vector<128x128xbf16>, vector<16x128xf32> -> vector<16x128xf32>
    %c6_155 = arith.constant 6 : index
    %c0_156 = arith.constant 0 : index
    %c0_157 = arith.constant 0 : index
    %169 = vector.load %arg16[%c6_155, %c0_156, %c0_157] : memref<9x16x16xbf16, #tpu.memory_space<vmem>>, vector<1x16x16xbf16>
    %170 = vector.shape_cast %169 : vector<1x16x16xbf16> to vector<16x16xbf16>
    %171 = arith.truncf %168 : vector<16x128xf32> to vector<16x128xbf16>
    %cst_158 = arith.constant dense<0.000000e+00> : vector<16x128xf32>
    %172 = tpu.matmul %170, %171, %cst_158 {dimension_numbers = #tpu.dot_dimension_numbers<[1], [0], [0], [1], [0, 0, 1, 1], [], []>} : vector<16x16xbf16>, vector<16x128xbf16>, vector<16x128xf32> -> vector<16x128xf32>
    %173 = arith.addf %165, %172 : vector<16x128xf32>
    %c7_159 = arith.constant 7 : index
    %c0_160 = arith.constant 0 : index
    %c0_161 = arith.constant 0 : index
    %174 = vector.load %arg13[%c7_159, %c0_160, %c0_161] : memref<9x128x128xbf16, #tpu.memory_space<vmem>>, vector<1x128x128xbf16>
    %175 = vector.shape_cast %174 : vector<1x128x128xbf16> to vector<128x128xbf16>
    %cst_162 = arith.constant dense<0.000000e+00> : vector<16x128xf32>
    %176 = tpu.matmul %118, %175, %cst_162 {dimension_numbers = #tpu.dot_dimension_numbers<[1], [0], [0], [1], [0, 0, 1, 1], [], []>} : vector<16x128xbf16>, vector<128x128xbf16>, vector<16x128xf32> -> vector<16x128xf32>
    %c7_163 = arith.constant 7 : index
    %c0_164 = arith.constant 0 : index
    %c0_165 = arith.constant 0 : index
    %177 = vector.load %arg16[%c7_163, %c0_164, %c0_165] : memref<9x16x16xbf16, #tpu.memory_space<vmem>>, vector<1x16x16xbf16>
    %178 = vector.shape_cast %177 : vector<1x16x16xbf16> to vector<16x16xbf16>
    %179 = arith.truncf %176 : vector<16x128xf32> to vector<16x128xbf16>
    %cst_166 = arith.constant dense<0.000000e+00> : vector<16x128xf32>
    %180 = tpu.matmul %178, %179, %cst_166 {dimension_numbers = #tpu.dot_dimension_numbers<[1], [0], [0], [1], [0, 0, 1, 1], [], []>} : vector<16x16xbf16>, vector<16x128xbf16>, vector<16x128xf32> -> vector<16x128xf32>
    %181 = arith.addf %173, %180 : vector<16x128xf32>
    %c8_167 = arith.constant 8 : index
    %c0_168 = arith.constant 0 : index
    %c0_169 = arith.constant 0 : index
    %182 = vector.load %arg13[%c8_167, %c0_168, %c0_169] : memref<9x128x128xbf16, #tpu.memory_space<vmem>>, vector<1x128x128xbf16>
    %183 = vector.shape_cast %182 : vector<1x128x128xbf16> to vector<128x128xbf16>
    %cst_170 = arith.constant dense<0.000000e+00> : vector<16x128xf32>
    %184 = tpu.matmul %118, %183, %cst_170 {dimension_numbers = #tpu.dot_dimension_numbers<[1], [0], [0], [1], [0, 0, 1, 1], [], []>} : vector<16x128xbf16>, vector<128x128xbf16>, vector<16x128xf32> -> vector<16x128xf32>
    %c8_171 = arith.constant 8 : index
    %c0_172 = arith.constant 0 : index
    %c0_173 = arith.constant 0 : index
    %185 = vector.load %arg16[%c8_171, %c0_172, %c0_173] : memref<9x16x16xbf16, #tpu.memory_space<vmem>>, vector<1x16x16xbf16>
    %186 = vector.shape_cast %185 : vector<1x16x16xbf16> to vector<16x16xbf16>
    %187 = arith.truncf %184 : vector<16x128xf32> to vector<16x128xbf16>
    %cst_174 = arith.constant dense<0.000000e+00> : vector<16x128xf32>
    %188 = tpu.matmul %186, %187, %cst_174 {dimension_numbers = #tpu.dot_dimension_numbers<[1], [0], [0], [1], [0, 0, 1, 1], [], []>} : vector<16x16xbf16>, vector<16x128xbf16>, vector<16x128xf32> -> vector<16x128xf32>
    %189 = arith.addf %181, %188 : vector<16x128xf32>
    %190 = vector.broadcast %109 : vector<16x1xf32> to vector<16x128xf32>
    %191 = arith.addf %189, %190 : vector<16x128xf32>
    %cst_175 = arith.constant 2.000000e-01 : f32
    %192 = vector.broadcast %cst_175 : f32 to vector<16x128xf32>
    %193 = arith.mulf %192, %191 : vector<16x128xf32>
    %194 = arith.maximumf %191, %193 : vector<16x128xf32>
    %195 = arith.truncf %194 : vector<16x128xf32> to vector<16x128xbf16>
    %cst_176 = arith.constant dense<0.000000e+00> : vector<8x128xf32>
    %196 = tpu.matmul %110, %195, %cst_176 {dimension_numbers = #tpu.dot_dimension_numbers<[1], [0], [0], [1], [0, 0, 1, 1], [], []>} : vector<8x16xbf16>, vector<16x128xbf16>, vector<8x128xf32> -> vector<8x128xf32>
    %197 = arith.addf %106, %196 : vector<8x128xf32>
    %c0_177 = arith.constant 0 : index
    %c0_178 = arith.constant 0 : index
    %198 = vector.load %arg19[%c0_177, %c0_178] : memref<13x8xbf16, #tpu.memory_space<vmem>>, vector<13x8xbf16>
    %c0_179 = arith.constant 0 : index
    %c0_180 = arith.constant 0 : index
    %199 = vector.load %arg20[%c0_179, %c0_180] : memref<3x13xf32, #tpu.memory_space<vmem>>, vector<3x13xf32>
    %200 = arith.truncf %197 : vector<8x128xf32> to vector<8x128xbf16>
    %cst_181 = arith.constant dense<0.000000e+00> : vector<13x128xf32>
    %201 = tpu.matmul %198, %200, %cst_181 {dimension_numbers = #tpu.dot_dimension_numbers<[1], [0], [0], [1], [0, 0, 1, 1], [], []>} : vector<13x8xbf16>, vector<8x128xbf16>, vector<13x128xf32> -> vector<13x128xf32>
    %cst_182 = arith.constant dense<0xFF800000> : vector<128xf32>
    %202 = vector.multi_reduction <maximumf>, %201, %cst_182 [0] : vector<13x128xf32> to vector<128xf32>
    %203 = vector.shape_cast %202 : vector<128xf32> to vector<1x128xf32>
    %204 = vector.broadcast %203 : vector<1x128xf32> to vector<13x128xf32>
    %205 = arith.subf %201, %204 : vector<13x128xf32>
    %206 = math.exp %205 : vector<13x128xf32>
    %cst_183 = arith.constant dense<0.000000e+00> : vector<128xf32>
    %207 = vector.multi_reduction <add>, %206, %cst_183 [0] : vector<13x128xf32> to vector<128xf32>
    %208 = vector.shape_cast %207 : vector<128xf32> to vector<1x128xf32>
    %209 = vector.broadcast %208 : vector<1x128xf32> to vector<13x128xf32>
    %210 = arith.divf %206, %209 : vector<13x128xf32>
    %cst_184 = arith.constant dense<0.000000e+00> : vector<3x128xf32>
    %211 = tpu.matmul %199, %210, %cst_184 {dimension_numbers = #tpu.dot_dimension_numbers<[1], [0], [0], [1], [0, 0, 1, 1], [], []>} : vector<3x13xf32>, vector<13x128xf32>, vector<3x128xf32> -> vector<3x128xf32>
    %c0_185 = arith.constant 0 : index
    %c0_186 = arith.constant 0 : index
    %212 = vector.load %arg21[%c0_185, %c0_186] : memref<3x128xf32, #tpu.memory_space<vmem>>, vector<3x128xf32>
    tpu.vector_store %arg21[%c0_185, %c0_186], %211 {strides = array<i32>} : memref<3x128xf32, #tpu.memory_space<vmem>>, vector<3x128xf32>,
    return
  }
}

</mosaic_0001>

<bundles_post_ra>
// kernel: generator_forward.1
= control target key start
LH: loop header
LB: loop body
LE: loop exit
PB: predicated region body
PF: predicated region fallthrough
CT: control target
= control target key end

     0   :  { %s5613_s0 = inlined_call_operand.vmem [shape: f32[32,2], index: 0, kind: input, shape index: {}]   ;;  %s5614_s1 = inlined_call_operand.vmem [shape: f32[2,32], index: 1, kind: input, shape index: {}]   ;;  %s5615_s2 = inlined_call_operand.vmem [shape: f32[16,32], index: 2, kind: input, shape index: {}]   ;;  %s5616_s3 = inlined_call_operand.hbm [shape: bf16[16,32], index: 3, kind: input, shape index: {}]   ;;  %s5617_s4 = inlined_call_operand.hbm [shape: f32[16,16], index: 4, kind: input, shape index: {}]   ;;  %s5618_s5 = inlined_call_operand.hbm [shape: bf16[9,32,32], index: 5, kind: input, shape index: {}]   ;;  %s5619_s6 = inlined_call_operand.vmem [shape: bf16[32,16], index: 6, kind: input, shape index: {}]   ;;  %s5620_s7 = inlined_call_operand.vmem [shape: f32[32,1], index: 7, kind: input, shape index: {}]   ;;  %s5621_s8 = inlined_call_operand.vmem [shape: bf16[9,32,32], index: 8, kind: input, shape index: {}]   ;;  %s5622_s9 = inlined_call_operand.vmem [shape: f32[32,1], index: 9, kind: input, shape index: {}]   ;;  %s5623_s10 = inlined_call_operand.hbm [shape: bf16[16,32], index: 10, kind: input, shape index: {}]   ;;  %s5624_s11 = inlined_call_operand.hbm [shape: bf16[8,16], index: 11, kind: input, shape index: {}]   ;;  %s5625_s12 = inlined_call_operand.vmem [shape: bf16[32,128], index: 12, kind: input, shape index: {}]   ;;  %s5626_s13 = inlined_call_operand.hbm [shape: bf16[9,128,128], index: 13, kind: input, shape index: {}]   ;;  %s5627_s14 = inlined_call_operand.vmem [shape: bf16[16,8], index: 14, kind: input, shape index: {}]   ;;  %s5628_s15 = inlined_call_operand.vmem [shape: f32[16,1], index: 15, kind: input, shape index: {}]   ;;  %s5629_s16 = inlined_call_operand.vmem [shape: bf16[9,16,16], index: 16, kind: input, shape index: {}]   ;;  %s5630_s17 = inlined_call_operand.vmem [shape: f32[16,1], index: 17, kind: input, shape index: {}]   ;;  %s5631_s18 = inlined_call_operand.hbm [shape: bf16[8,16], index: 18, kind: input, shape index: {}]   ;;  %s5632_s19 = inlined_call_operand.vmem [shape: bf16[13,8], index: 19, kind: input, shape index: {}]   ;;  %s5633_s20 = inlined_call_operand.hbm [shape: f32[3,13], index: 20, kind: input, shape index: {}]   ;;  %s5634_s21 = inlined_call_operand.vmem [shape: f32[3,128], index: 21, kind: output, shape index: {}]  }
   0x1   :  { %5640 = sst [smem:[#allocation20_spill]] %s5613_s0 }
   0x2   :  { %5641 = sst [smem:[#allocation21_spill]] %s5614_s1 }
   0x3   :  { %5642 = sst [smem:[#allocation22_spill]] %s5615_s2 }
   0x4   :  { %5643 = sst [smem:[#allocation23_spill]] %s5616_s3 }
   0x5   :  { %5644 = sst [smem:[#allocation24_spill]] %s5617_s4 }
   0x6   :  { %5645 = sst [smem:[#allocation25_spill]] %s5618_s5 }
   0x7   :  { %5646 = sst [smem:[#allocation26_spill]] %s5632_s19 }
   0x8   :  { %5647 = sst [smem:[#allocation27_spill]] %s5634_s21 }
   0x9   :  { %26 = vsyncpa [#allocation3], 0 }
   0xa   :  { %27 = vsyncpa [#allocation5], 0 }
   0xb   :  { %28 = vsyncpa [#allocation8], 0 }
   0xc   :  { %29 = vsyncpa [#allocation11], 0 }
   0xd   :  { %30 = vsyncpa [#allocation14], 0  ;;  %s4991_s2 = smov [#allocation4]   ;;  %s5648_s3 = sld [smem:[#allocation24_spill]] }
   0xe   :  { %s54_s25 = sshll.u32 %s4991_s2, 4  ;;  %s55_s25 = int_to_ptr.vmem [resolvable:$true] %s54_s25 }
  0x13   :  { %s4805_s28 = scalar_lea.hbm %s5648_s3, 256 }
  0x14   :  { %p4806_p0 = scmp.ne.s32.totalorder %s5648_s3, %s4805_s28  ;;  %p4809_p1 = scmp.lt.u32.totalorder %s4805_s28, %s5648_s3 }
  0x16   :  { %p4811_p2 = pnand %p4809_p1, %p4806_p0 }
  0x18   :  { %4814 = shalt.err (!%p4811_p2)
}
  0x19   :  { %s4815_s5 = scalar_lea.vmem %s55_s25, 256  ;;  %p4820_p4 = scmp.lt.s32.totalorder %s55_s25, %s55_s25 }
  0x1a   :  { %p4816_p3 = scmp.ne.s32.totalorder %s55_s25, %s4815_s5  ;;  %p4821_p5 = scmp.lt.s32.totalorder %s4815_s5, %s4815_s5 }
  0x1c   :  { %p4822_p6 = por %p4821_p5, %p4820_p4 }
  0x1e   :  { %p4823_p7 = pnand %p4822_p6, %p4816_p3 }
  0x20   :  { %4826 = shalt.err (!%p4823_p7)
}
  0x21   :  { %s4992_s22 = smov 128   ;;  %s4993_s23 = smov 8  }
  0x22   :  { %60 = dma.hbm_to_vmem [thread:$0]  %s5648_s3, 256, %s55_s25, [#allocation5], %s4992_s22, %s4992_s22, %s4993_s23  }
  0x23   :  { %s4994_s2 = smov [#allocation7]   ;;  %s4995_s27 = smov [#allocation10]  }
  0x24   :  { %s86_s26 = sshll.u32 %s4994_s2, 4  ;;  %s110_s28 = sshll.u32 %s4995_s27, 4  ;;  %s87_s26 = int_to_ptr.vmem [resolvable:$true] %s86_s26  ;;  %s111_s28 = int_to_ptr.vmem [resolvable:$true] %s110_s28 }
  0x25   :  { %s4827_s4 = scalar_lea.hbm %s5623_s10, 128 }
  0x26   :  { %p4828_p8 = scmp.ne.s32.totalorder %s5623_s10, %s4827_s4  ;;  %p4831_p9 = scmp.lt.u32.totalorder %s4827_s4, %s5623_s10 }
  0x28   :  { %p4833_p10 = pnand %p4831_p9, %p4828_p8 }
  0x2a   :  { %4836 = shalt.err (!%p4833_p10)
}
  0x2b   :  { %s4837_s25 = scalar_lea.vmem %s87_s26, 128  ;;  %p4842_p12 = scmp.lt.s32.totalorder %s87_s26, %s87_s26 }
  0x2c   :  { %p4838_p11 = scmp.ne.s32.totalorder %s87_s26, %s4837_s25  ;;  %p4843_p13 = scmp.lt.s32.totalorder %s4837_s25, %s4837_s25 }
  0x2e   :  { %p4844_p0 = por %p4843_p13, %p4842_p12 }
  0x30   :  { %p4845_p1 = pnand %p4844_p0, %p4838_p11 }
  0x32   :  { %4848 = shalt.err (!%p4845_p1)
}
  0x33   :  { %s4996_s3 = smov 64   ;;  %s4997_s22 = smov 4  }
  0x34   :  { %92 = dma.hbm_to_vmem [thread:$0]  %s5623_s10, 128, %s87_s26, [#allocation8], %s4996_s3, %s4996_s3, %s4997_s22  }
  0x35   :  { %s4849_s24 = scalar_lea.hbm %s5626_s13, 9216 }
  0x36   :  { %p4850_p2 = scmp.ne.s32.totalorder %s5626_s13, %s4849_s24  ;;  %p4853_p3 = scmp.lt.u32.totalorder %s4849_s24, %s5626_s13 }
  0x38   :  { %p4855_p4 = pnand %p4853_p3, %p4850_p2 }
  0x3a   :  { %4858 = shalt.err (!%p4855_p4)
}
  0x3b   :  { %s4859_s4 = scalar_lea.vmem %s111_s28, 9216  ;;  %p4864_p6 = scmp.lt.s32.totalorder %s111_s28, %s111_s28 }
  0x3c   :  { %p4860_p5 = scmp.ne.s32.totalorder %s111_s28, %s4859_s4  ;;  %p4865_p7 = scmp.lt.s32.totalorder %s4859_s4, %s4859_s4 }
  0x3e   :  { %p4866_p8 = por %p4865_p7, %p4864_p6 }
  0x40   :  { %p4867_p9 = pnand %p4866_p8, %p4860_p5 }
  0x42   :  { %4870 = shalt.err (!%p4867_p9)
}
  0x43   :  { %116 = dma.hbm_to_vmem [thread:$0]  %s5626_s13, 9216, %s111_s28, [#allocation11], %s4996_s3, %s4996_s3, %s4997_s22  }
  0x44   :  { %s4998_s30 = smov [#allocation2]   ;;  %s4999_s25 = smov [#allocation6]  }
  0x45   :  { %s42_s5 = sshll.u32 %s4998_s30, 4  ;;  %s66_s23 = sshll.u32 %s4999_s25, 4  ;;  %s43_s5 = int_to_ptr.vmem [resolvable:$true] %s42_s5  ;;  %s67_s23 = int_to_ptr.vmem [resolvable:$true] %s66_s23 }
  0x46   :  { %s5649_s21 = sld [smem:[#allocation23_spill]] }
  0x4c   :  { %s4871_s24 = scalar_lea.hbm %s5649_s21, 128 }
  0x4d   :  { %p4872_p10 = scmp.ne.s32.totalorder %s5649_s21, %s4871_s24  ;;  %p4875_p11 = scmp.lt.u32.totalorder %s4871_s24, %s5649_s21 }
  0x4f   :  { %p4877_p12 = pnand %p4875_p11, %p4872_p10 }
  0x51   :  { %4880 = shalt.err (!%p4877_p12)
}
  0x52   :  { %s4881_s13 = scalar_lea.vmem %s43_s5, 128  ;;  %p4886_p0 = scmp.lt.s32.totalorder %s43_s5, %s43_s5 }
  0x53   :  { %p4882_p13 = scmp.ne.s32.totalorder %s43_s5, %s4881_s13  ;;  %p4887_p1 = scmp.lt.s32.totalorder %s4881_s13, %s4881_s13 }
  0x55   :  { %p4888_p2 = por %p4887_p1, %p4886_p0 }
  0x57   :  { %p4889_p3 = pnand %p4888_p2, %p4882_p13 }
  0x59   :  { %4892 = shalt.err (!%p4889_p3)
}
  0x5a   :  { %48 = dma.hbm_to_vmem [thread:$0]  %s5649_s21, 128, %s43_s5, [#allocation3], %s4996_s3, %s4996_s3, %s4997_s22  }
  0x5b   :  { %s5650_s30 = sld [smem:[#allocation25_spill]] }
  0x61   :  { %s4893_s25 = scalar_lea.hbm %s5650_s30, 2304 }
  0x62   :  { %p4894_p4 = scmp.ne.s32.totalorder %s5650_s30, %s4893_s25  ;;  %p4897_p5 = scmp.lt.u32.totalorder %s4893_s25, %s5650_s30 }
  0x64   :  { %p4899_p6 = pnand %p4897_p5, %p4894_p4 }
  0x66   :  { %4902 = shalt.err (!%p4899_p6)
}
  0x67   :  { %s4903_s27 = scalar_lea.vmem %s67_s23, 2304  ;;  %p4908_p8 = scmp.lt.s32.totalorder %s67_s23, %s67_s23 }
  0x68   :  { %p4904_p7 = scmp.ne.s32.totalorder %s67_s23, %s4903_s27  ;;  %p4909_p9 = scmp.lt.s32.totalorder %s4903_s27, %s4903_s27 }
  0x6a   :  { %p4910_p10 = por %p4909_p9, %p4908_p8 }
  0x6c   :  { %p4911_p11 = pnand %p4910_p10, %p4904_p7 }
  0x6e   :  { %4914 = shalt.err (!%p4911_p11)
}
  0x6f   :  { %72 = dma.hbm_to_vmem [thread:$0]  %s5650_s30, 2304, %s67_s23, [#allocation5], %s4996_s3, %s4996_s3, %s4997_s22  }
  0x70   :  { %s5000_s29 = smov [#allocation9]   ;;  %s5001_s13 = smov [#allocation12]  }
  0x71   :  { %s99_s0 = sshll.u32 %s5000_s29, 4  ;;  %s131_s28 = sshll.u32 %s5001_s13, 4  ;;  %s100_s0 = int_to_ptr.vmem [resolvable:$true] %s99_s0  ;;  %s132_s28 = int_to_ptr.vmem [resolvable:$true] %s131_s28 }
  0x72   :  { %s4915_s26 = scalar_lea.hbm %s5624_s11, 64 }
  0x73   :  { %p4916_p12 = scmp.ne.s32.totalorder %s5624_s11, %s4915_s26  ;;  %p4919_p13 = scmp.lt.u32.totalorder %s4915_s26, %s5624_s11 }
  0x75   :  { %p4921_p0 = pnand %p4919_p13, %p4916_p12 }
  0x77   :  { %4924 = shalt.err (!%p4921_p0)
}
  0x78   :  { %s4925_s3 = scalar_lea.vmem %s100_s0, 64  ;;  %p4930_p2 = scmp.lt.s32.totalorder %s100_s0, %s100_s0 }
  0x79   :  { %p4926_p1 = scmp.ne.s32.totalorder %s100_s0, %s4925_s3  ;;  %p4931_p3 = scmp.lt.s32.totalorder %s4925_s3, %s4925_s3 }
  0x7b   :  { %p4932_p4 = por %p4931_p3, %p4930_p2 }
  0x7d   :  { %p4933_p5 = pnand %p4932_p4, %p4926_p1 }
  0x7f   :  { %4936 = shalt.err (!%p4933_p5)
}
  0x80   :  { %102 = dma.hbm_to_vmem [thread:$0]  %s5624_s11, 64, %s100_s0, [#allocation8]  }
  0x81   :  { %s4937_s27 = scalar_lea.hbm %s5631_s18, 64 }
  0x82   :  { %p4938_p6 = scmp.ne.s32.totalorder %s5631_s18, %s4937_s27  ;;  %p4941_p7 = scmp.lt.u32.totalorder %s4937_s27, %s5631_s18 }
  0x84   :  { %p4943_p8 = pnand %p4941_p7, %p4938_p6 }
  0x86   :  { %4946 = shalt.err (!%p4943_p8)
}
  0x87   :  { %s4947_s4 = scalar_lea.vmem %s132_s28, 64  ;;  %p4952_p10 = scmp.lt.s32.totalorder %s132_s28, %s132_s28 }
  0x88   :  { %p4948_p9 = scmp.ne.s32.totalorder %s132_s28, %s4947_s4  ;;  %p4953_p11 = scmp.lt.s32.totalorder %s4947_s4, %s4947_s4 }
  0x8a   :  { %p4954_p12 = por %p4953_p11, %p4952_p10 }
  0x8c   :  { %p4955_p13 = pnand %p4954_p12, %p4948_p9 }
  0x8e   :  { %4958 = shalt.err (!%p4955_p13)
}
  0x8f   :  { %134 = dma.hbm_to_vmem [thread:$0]  %s5631_s18, 64, %s132_s28, [#allocation11]  }
  0x90   :  { %s5002_s10 = smov [#allocation13]   ;;  %s4959_s19 = scalar_lea.hbm %s5633_s20, 64 }
  0x91   :  { %s143_s26 = sshll.u32 %s5002_s10, 4  ;;  %p4960_p0 = scmp.ne.s32.totalorder %s5633_s20, %s4959_s19  ;;  %s144_s26 = int_to_ptr.vmem [resolvable:$true] %s143_s26 }
  0x92   :  { %p4963_p1 = scmp.lt.u32.totalorder %s4959_s19, %s5633_s20 }
  0x94   :  { %p4965_p2 = pnand %p4963_p1, %p4960_p0 }
  0x96   :  { %4968 = shalt.err (!%p4965_p2)
}
  0x97   :  { %s4969_s30 = scalar_lea.vmem %s144_s26, 64  ;;  %p4974_p4 = scmp.lt.s32.totalorder %s144_s26, %s144_s26 }
  0x98   :  { %p4970_p3 = scmp.ne.s32.totalorder %s144_s26, %s4969_s30  ;;  %p4975_p5 = scmp.lt.s32.totalorder %s4969_s30, %s4969_s30 }
  0x9a   :  { %p4976_p6 = por %p4975_p5, %p4974_p4 }
  0x9c   :  { %p4977_p7 = pnand %p4976_p6, %p4970_p3 }
  0x9e   :  { %4980 = shalt.err (!%p4977_p7)
}
  0x9f   :  { %146 = dma.hbm_to_vmem [thread:$0]  %s5633_s20, 64, %s144_s26, [#allocation14]  }
  0xa0   :  { %4981 = dma.done.wait [#allocation3], 128  }
  0xa1   :  { %4982 = vsyncadd [#allocation3], 4294967168 }
  0xa2   :  { %4983 = dma.done.wait [#allocation5], 2560  }
  0xa3   :  { %4984 = vsyncadd [#allocation5], 4294964736 }
  0xa4   :  { %4985 = dma.done.wait [#allocation8], 192  }
  0xa5   :  { %4986 = vsyncadd [#allocation8], 4294967104 }
  0xa6   :  { %4987 = dma.done.wait [#allocation11], 9280  }
  0xa7   :  { %4988 = vsyncadd [#allocation11], 4294958016 }
  0xa8   :  { %4989 = dma.done.wait [#allocation14], 64  }
  0xa9   :  { %4990 = vsyncadd [#allocation14], 4294967232  ;;  %v5003_v0 = vmov 0.0   ;;  %vm5004_vm0 = vmmov 0   ;;  %s5651_s20 = sld [smem:[#allocation20_spill]]  ;;  %vm190_vm1 = vcmask 261120  }
  0xaa   :  { %4164 = vmatprep.subr.bf16.mxu0 %v5003_v0  ;;  %4168 = vmatprep.mubr.msk.bf16.mxu0 %vm5004_vm0, %v5003_v0  ;;  %v4674_v7 = vld [vmem:[#allocation2] sm:$0xff]   ;;  %s5652_s26 = sld [smem:[#allocation21_spill]]  ;;  %vm242_vm2 = vcmask 1041408   ;;  %s5653_s19 = sld [smem:[#allocation22_spill]]  ;;  %vm235_vm3 = vcmask 15360   ;;  %v181_v14 = vld [vmem:[#allocation4] sm:$0xff] }
  0xab   :  { %vm321_vm4 = vcmask 130048   ;;  %v182_v17 = vld [vmem:[#allocation4 + $0x8] sm:$0xff]  ;;  %v4675_v18 = vld [vmem:[%s5619_s6] sm:$0xff]   ;;  %v5005_v21 = vmov 0   ;;  %v410_v22 = vld [vmem:[%s5620_s7 + $0x8] sm:$0xff]  ;;  %vm2006_vm5 = vcmask 1043456  }
  0xac   :  { %v409_v19 = vld [vmem:[%s5620_s7] sm:$0xff]  ;;  %v411_v20 = vld [vmem:[%s5620_s7 + $0x10] sm:$0xff]  ;;  %4672 = vset.pattern.permute.xlu0 %v5005_v21  ;;  %4673 = vset.pattern.permute.xlu1 %v5005_v21  ;;  %v412_v23 = vld [vmem:[%s5620_s7 + $0x18] sm:$0xff]  ;;  %vm2002_vm6 = vcmask 64512   ;;  %s5654_s2 = sld [smem:[#allocation26_spill]]  ;;  %vm3616_vm7 = vcmask 1044480  }
  0xad   :  { %422 = vperm.xlu0 %4672, %v409_v19   ;;  %432 = vperm.xlu1 %4673, %v411_v20   ;;  %v413_v24 = vld [vmem:[%s5622_s9] sm:$0xff]  ;;  %v414_v25 = vld [vmem:[%s5622_s9 + $0x8] sm:$0xff]  ;;  %v415_v26 = vld [vmem:[%s5622_s9 + $0x10] sm:$0xff]  ;;  %vm5007_vm8 = vmmov 1   ;;  %vm3642_vm10 = vcmask 105472   ;;  %s5655_s5 = sld [smem:[#allocation27_spill]] }
  0xae   :  { %v416_v27 = vld [vmem:[%s5622_s9 + $0x18] sm:$0xff]  ;;  %v1981_v28 = vld [vmem:[%s5628_s15] sm:$0xff]  ;;  %v1982_v29 = vld [vmem:[%s5628_s15 + $0x8] sm:$0xff] }
  0xaf   :  { %v172_v1 = vld [vmem:[%s5651_s20] sm:$0xff]  ;;  %v173_v2 = vld [vmem:[%s5651_s20 + $0x8] sm:$0xff]  ;;  %v174_v3 = vld [vmem:[%s5651_s20 + $0x10] sm:$0xff] }
  0xb0   :  { %v183_v4 = vpack.c.bf16 %v173_v2, %v172_v1  ;;  %v175_v5 = vld [vmem:[%s5651_s20 + $0x18] sm:$0xff]  ;;  %v176_v8 = vld [vmem:[%s5652_s26] sm:$0x3]  ;;  %v178_v10 = vld [vmem:[%s5653_s19 + $0x8] sm:$0xff] }
  0xb1   :  { %v184_v6 = vpack.c.bf16 %v175_v5, %v174_v3  ;;  %v177_v9 = vld [vmem:[%s5653_s19] sm:$0xff]  ;;  %4172 = vmatprep.subr.msk.mxu1 %vm242_vm2, %v176_v8  ;;  %427 = vperm.xlu0 %4672, %v410_v22   ;;  %v1984_v31 = vld [vmem:[%s5630_s17 + $0x8] sm:$0xff]  ;;  %v4677_v40 = vld [vmem:[#allocation6] sm:$0xff]  }
  0xb2   :  { %4165 = vmatpush3.bf16.msra.mxu0 %v183_v4  ;;  %v4615_v11 = vpack.c.bf16 %v178_v10, %v177_v9  ;;  %4173 = vmatpush3.msk.msra.mxu1 %vm242_vm2, %v176_v8  ;;  %v1983_v30 = vld [vmem:[%s5630_s17] sm:$0xff]  ;;  %v4676_v39 = vld [vmem:[%s5619_s6 + $0x8] sm:$0xff]   ;;  %v4680_v43 = vld [vmem:[#allocation6 + $0x18] sm:$0xff]  }
  0xb3   :  { %4166 = vmatprep.subr.bf16.mxu0 %v5003_v0  ;;  %437 = vperm.xlu1 %4673, %v412_v23   ;;  %v4678_v41 = vld [vmem:[#allocation6 + $0x10] sm:$0xff]   ;;  %v4679_v42 = vld [vmem:[#allocation6 + $0x8] sm:$0xff]   ;;  %v4681_v44 = vld [vmem:[#allocation6 + $0x20] sm:$0xff]  }
  0xb4   :  { %4616 = vmatprep.subr.bf16.mxu1 %v4615_v11  ;;  %v4682_v4 = vld [vmem:[#allocation6 + $0x28] sm:$0xff]   ;;  %v4683_v5 = vld [vmem:[#allocation6 + $0x30] sm:$0xff]   ;;  %v4688_v10 = vld [vmem:[#allocation6 + $0x58] sm:$0xff]  }
  0xb5   :  { %1791 = vperm.xlu0 %4672, %v413_v24   ;;  %v4686_v8 = vld [vmem:[#allocation6 + $0x48] sm:$0xff]   ;;  %v4687_v9 = vld [vmem:[#allocation6 + $0x50] sm:$0xff]   ;;  %vm4621_vm9 = vmpackc.low %vm3616_vm7, %vm5007_vm8 }
  0xb6   :  { %4167 = vmatpush3.bf16.msra.mxu0 %v184_v6  ;;  %v4684_v6 = vld [vmem:[#allocation6 + $0x38] sm:$0xff]  }
  0xb7   :  { %1796 = vperm.xlu1 %4673, %v414_v25   ;;  %4190 = vmatprep.subr.bf16.mxu0 %v4677_v40 }
  0xb9   :  { %4169 = vmatmul.mubr.msk.bf16.vlgmr.msra.gmra.mrb[0].mxu0 %vm190_vm1, %v4674_v7  ;;  %1801 = vperm.xlu0 %4672, %v415_v26   ;;  %v4685_v7 = vld [vmem:[#allocation6 + $0x40] sm:$0xff]  }
  0xba   :  { %4191 = vmatpush3.bf16.msra.mxu0 %v4677_v40 }
  0xbb   :  { %1806 = vperm.xlu1 %4673, %v416_v27   ;;  %4192 = vmatprep.subr.bf16.mxu0 %v4679_v42 }
  0xbd   :  { %1989 = vperm.xlu0 %4672, %v1981_v28  }
  0xbe   :  { %4193 = vmatpush3.bf16.msra.mxu0 %v4679_v42 }
  0xbf   :  { %1994 = vperm.xlu1 %4673, %v1982_v29  }
  0xc1   :  { %3501 = vperm.xlu0 %4672, %v1983_v30  }
  0xc3   :  { %3506 = vperm.xlu1 %4673, %v1984_v31  }
 0x12c   :  { %v433_v45 = vpop.permute.xlu1 %432  ;;  %v423_v46 = vpop.permute.xlu0 %422 }
 0x130   :  { %v428_v53 = vpop.permute.xlu0 %427 }
 0x132   :  { %v438_v50 = vpop.permute.xlu1 %437 }
 0x18c   :  { %v228_v12 = vpop.f32.mrb[0].mxu0 }
 0x18d   :  { %v4170_v13 = vpop.f32.mrb[1].mxu0  ;;  %4174 = vmatprep.mubr.msk.f32.mxu1 %vm235_vm3, %v228_v12  ;;  %v4690_v12 = vld [vmem:[#allocation6 + $0x68] sm:$0xff]  }
 0x18e   :  { %v231_v15 = vpop.f32.mrb[2].mxu0  ;;  %v4691_v13 = vld [vmem:[#allocation6 + $0x70] sm:$0xff]  }
 0x18f   :  { %v4171_v16 = vpop.f32.mrb[3].mxu0  ;;  %4175 = vmatmul.mubr.msk.f32.vlgmr.msra.gmra.mrb[0].mxu1 %vm235_vm3, %v231_v15  ;;  %v4693_v15 = vld [vmem:[#allocation6 + $0x80] sm:$0xff]  }
 0x190   :  { %4618 = vmatpush3.bf16.msra.mxu1 %v4615_v11  ;;  %4181 = vmatprep.mubr.msk.f32.mxu1 %vm321_vm4, %v181_v14  ;;  %v4689_v11 = vld [vmem:[#allocation6 + $0x60] sm:$0xff]   ;;  %v4692_v14 = vld [vmem:[#allocation6 + $0x78] sm:$0xff]   ;;  %v4694_v16 = vld [vmem:[#allocation6 + $0x88] sm:$0xff]  }
 0x193   :  { %4182 = vmatmul.mubr.msk.f32.vlgmr.msra.gmra.mrb[2].mxu1 %vm321_vm4, %v182_v17  ;;  %v4695_v17 = vld [vmem:[%s5621_s8 + $0x10] sm:$0xff]  }
 0x194   :  { %4186 = vmatprep.mubr.msk.bf16.mxu1 %vm321_vm4, %v4675_v18 }
 0x262   :  { %v4176_v32 = vpop.f32.mrb[0].mxu1 }
 0x263   :  { %v312_v33 = vpop.f32.mrb[1].mxu1 }
 0x266   :  { %v4183_v34 = vpop.f32.mrb[2].mxu1 }
 0x267   :  { %v5294_v35 = vmul.f32 %v4183_v34, %v4176_v32  ;;  %v394_v36 = vpop.f32.mrb[3].mxu1 }
 0x268   :  { %v5296_v37 = vmul.f32 %v394_v36, %v312_v33  ;;  %v4696_v33 = vld [vmem:[%s5621_s8 + $0x18] sm:$0xff]  }
 0x26a   :  { %v419_v38 = vpack.c.bf16 %v5294_v35, %v5296_v37 }
 0x26c   :  { %4184 = vmatprep.subr.bf16.mxu1 %v419_v38 }
 0x26d   :  { %4185 = vmatpush3.bf16.msra.mxu1 %v419_v38  ;;  %v4697_v38 = vld [vmem:[%s5621_s8] sm:$0xff]  }
 0x26e   :  { %4198 = vmatprep.subr.bf16.mxu1 %v4678_v41 }
 0x270   :  { %4187 = vmatmul.mubr.msk.bf16.vlgmr.msra.gmra.mrb[4].mxu1 %vm321_vm4, %v4676_v39 }
 0x271   :  { %4199 = vmatpush3.bf16.msra.mxu1 %v4678_v41 }
 0x272   :  { %4200 = vmatprep.subr.bf16.mxu1 %v4680_v43 }
 0x275   :  { %4201 = vmatpush3.bf16.msra.mxu1 %v4680_v43 }
 0x276   :  { %4222 = vmatprep.subr.bf16.mxu1 %v4681_v44 }
 0x343   :  { %v4188_v47 = vpop.f32.mrb[4].mxu1 }
 0x344   :  { %v499_v48 = vadd.f32 %v4188_v47, %v433_v45  ;;  %v490_v49 = vpop.f32.mrb[5].mxu1  ;;  %v4699_v47 = vld [vmem:[%s5621_s8 + $0x20] sm:$0xff]  }
 0x345   :  { %v491_v51 = vadd.f32 %v490_v49, %v423_v46  ;;  %v4189_v52 = vpop.f32.mrb[6].mxu1  ;;  %v4698_v46 = vld [vmem:[%s5621_s8 + $0x8] sm:$0xff]  }
 0x346   :  { %v507_v54 = vmul.f32 0.2, %v499_v48  ;;  %v502_v55 = vadd.f32 %v4189_v52, %v438_v50  ;;  %v493_v56 = vpop.f32.mrb[7].mxu1 }
 0x347   :  { %v505_v57 = vmul.f32 0.2, %v491_v51  ;;  %v494_v58 = vadd.f32 %v493_v56, %v428_v53 }
 0x348   :  { %v508_v59 = vmul.f32 0.2, %v502_v55  ;;  %v511_v61 = vmax.f32 %v499_v48, %v507_v54 }
 0x349   :  { %v506_v60 = vmul.f32 0.2, %v494_v58  ;;  %v509_v63 = vmax.f32 %v491_v51, %v505_v57  ;;  %v4700_v57 = vld [vmem:[%s5621_s8 + $0x28] sm:$0xff]  }
 0x34a   :  { %v512_v62 = vmax.f32 %v502_v55, %v508_v59 }
 0x34b   :  { %v510_v1 = vmax.f32 %v494_v58, %v506_v60  ;;  %v4701_v60 = vld [vmem:[%s5621_s8 + $0x30] sm:$0xff]  }
 0x34c   :  { %v514_v2 = vpack.c.bf16 %v512_v62, %v511_v61 }
 0x34d   :  { %v513_v3 = vpack.c.bf16 %v510_v1, %v509_v63 }
 0x34f   :  { %4194 = vmatprep.mubr.msk.bf16.mxu0 %vm190_vm1, %v513_v3  ;;  %4202 = vmatprep.mubr.msk.bf16.mxu1 %vm190_vm1, %v513_v3 }
 0x350   :  { %4195 = vmatmul.mubr.msk.bf16.vlgmr.msra.gmra.mrb[4].mxu0 %vm190_vm1, %v514_v2  ;;  %4203 = vmatmul.mubr.msk.bf16.vlgmr.msra.gmra.mrb[8].mxu1 %vm190_vm1, %v514_v2 }
 0x351   :  { %4223 = vmatpush3.bf16.msra.mxu1 %v4681_v44  ;;  %4226 = vmatprep.mubr.msk.bf16.mxu1 %vm190_vm1, %v513_v3 }
 0x352   :  { %4224 = vmatprep.subr.bf16.mxu1 %v4682_v4  ;;  %4210 = vmatprep.mubr.msk.bf16.mxu0 %vm190_vm1, %v4695_v17 }
 0x355   :  { %4225 = vmatpush3.bf16.msra.mxu1 %v4682_v4 }
 0x356   :  { %4238 = vmatprep.subr.bf16.mxu1 %v4683_v5 }
 0x358   :  { %4227 = vmatmul.mubr.msk.bf16.vlgmr.msra.gmra.mrb[12].mxu1 %vm190_vm1, %v514_v2 }
 0x359   :  { %4239 = vmatpush3.bf16.msra.mxu1 %v4683_v5  ;;  %4242 = vmatprep.mubr.msk.bf16.mxu1 %vm190_vm1, %v513_v3  ;;  %v4702_v5 = vld [vmem:[%s5621_s8 + $0x38] sm:$0xff]  }
 0x35a   :  { %4240 = vmatprep.subr.bf16.mxu1 %v4684_v6 }
 0x35d   :  { %4241 = vmatpush3.bf16.msra.mxu1 %v4684_v6  ;;  %v4703_v6 = vld [vmem:[%s5621_s8 + $0x40] sm:$0xff]  }
 0x35e   :  { %4254 = vmatprep.subr.bf16.mxu1 %v4685_v7 }
 0x360   :  { %4243 = vmatmul.mubr.msk.bf16.vlgmr.msra.gmra.mrb[16].mxu1 %vm190_vm1, %v514_v2 }
 0x361   :  { %4255 = vmatpush3.bf16.msra.mxu1 %v4685_v7  ;;  %4258 = vmatprep.mubr.msk.bf16.mxu1 %vm190_vm1, %v513_v3 }
 0x362   :  { %4256 = vmatprep.subr.bf16.mxu1 %v4686_v8 }
 0x365   :  { %4257 = vmatpush3.bf16.msra.mxu1 %v4686_v8 }
 0x366   :  { %4270 = vmatprep.subr.bf16.mxu1 %v4687_v9 }
 0x368   :  { %4259 = vmatmul.mubr.msk.bf16.vlgmr.msra.gmra.mrb[20].mxu1 %vm190_vm1, %v514_v2 }
 0x369   :  { %4271 = vmatpush3.bf16.msra.mxu1 %v4687_v9  ;;  %4274 = vmatprep.mubr.msk.bf16.mxu1 %vm190_vm1, %v513_v3 }
 0x36a   :  { %4272 = vmatprep.subr.bf16.mxu1 %v4688_v10 }
 0x36d   :  { %4273 = vmatpush3.bf16.msra.mxu1 %v4688_v10 }
 0x36e   :  { %4286 = vmatprep.subr.bf16.mxu1 %v4689_v11 }
 0x370   :  { %4275 = vmatmul.mubr.msk.bf16.vlgmr.msra.gmra.mrb[24].mxu1 %vm190_vm1, %v514_v2 }
 0x371   :  { %4287 = vmatpush3.bf16.msra.mxu1 %v4689_v11  ;;  %4290 = vmatprep.mubr.msk.bf16.mxu1 %vm190_vm1, %v513_v3 }
 0x372   :  { %4288 = vmatprep.subr.bf16.mxu1 %v4690_v12 }
 0x375   :  { %4289 = vmatpush3.bf16.msra.mxu1 %v4690_v12 }
 0x376   :  { %4302 = vmatprep.subr.bf16.mxu1 %v4691_v13 }
 0x378   :  { %4291 = vmatmul.mubr.msk.bf16.vlgmr.msra.gmra.mrb[28].mxu1 %vm190_vm1, %v514_v2 }
 0x379   :  { %4303 = vmatpush3.bf16.msra.mxu1 %v4691_v13  ;;  %4306 = vmatprep.mubr.msk.bf16.mxu1 %vm190_vm1, %v513_v3 }
 0x37a   :  { %4304 = vmatprep.subr.bf16.mxu1 %v4692_v14 }
 0x37d   :  { %4305 = vmatpush3.bf16.msra.mxu1 %v4692_v14 }
 0x37e   :  { %4318 = vmatprep.subr.bf16.mxu1 %v4693_v15 }
 0x380   :  { %4307 = vmatmul.mubr.msk.bf16.vlgmr.msra.gmra.mrb[32].mxu1 %vm190_vm1, %v514_v2 }
 0x381   :  { %4319 = vmatpush3.bf16.msra.mxu1 %v4693_v15  ;;  %4322 = vmatprep.mubr.msk.bf16.mxu1 %vm190_vm1, %v513_v3 }
 0x382   :  { %4320 = vmatprep.subr.bf16.mxu1 %v4694_v16 }
 0x385   :  { %4321 = vmatpush3.bf16.msra.mxu1 %v4694_v16  ;;  %v4704_v16 = vld [vmem:[%s5621_s8 + $0x48] sm:$0xff]  }
 0x386   :  { %4334 = vmatprep.subr.bf16.mxu1 %v5003_v0 }
 0x388   :  { %4323 = vmatmul.mubr.msk.bf16.vlgmr.msra.gmra.mrb[36].mxu1 %vm190_vm1, %v514_v2 }
 0x389   :  { %4338 = vmatprep.mubr.msk.bf16.mxu1 %vm5004_vm0, %v5003_v0 }
 0x423   :  { %v4196_v18 = vpop.f32.mrb[4].mxu0  ;;  %v4204_v19 = vpop.f32.mrb[8].mxu1 }
 0x424   :  { %v571_v20 = vpop.f32.mrb[5].mxu0  ;;  %v643_v21 = vpop.f32.mrb[9].mxu1 }
 0x425   :  { %v4197_v22 = vpop.f32.mrb[6].mxu0  ;;  %v4205_v23 = vpop.f32.mrb[10].mxu1 }
 0x426   :  { %v591_v24 = vpack.c.bf16 %v4197_v22, %v4196_v18  ;;  %v664_v25 = vpack.c.bf16 %v4205_v23, %v4204_v19  ;;  %v574_v26 = vpop.f32.mrb[7].mxu0  ;;  %v646_v27 = vpop.f32.mrb[11].mxu1  ;;  %v4705_v19 = vld [vmem:[%s5621_s8 + $0x50] sm:$0xff]   ;;  %v4707_v22 = vld [vmem:[%s5621_s8 + $0x60] sm:$0xff]   ;;  %v4708_v23 = vld [vmem:[%s5621_s8 + $0x68] sm:$0xff]  }
 0x427   :  { %v590_v28 = vpack.c.bf16 %v574_v26, %v571_v20  ;;  %v663_v29 = vpack.c.bf16 %v646_v27, %v643_v21  ;;  %v4706_v21 = vld [vmem:[%s5621_s8 + $0x58] sm:$0xff]   ;;  %v4711_v26 = vld [vmem:[%s5621_s8 + $0x80] sm:$0xff]   ;;  %v4712_v27 = vld [vmem:[%s5621_s8 + $0x88] sm:$0xff]  }
 0x429   :  { %4206 = vmatprep.subr.bf16.mxu0 %v663_v29 }
 0x42a   :  { %4207 = vmatpush3.bf16.msra.mxu0 %v663_v29  ;;  %v1797_v29 = vpop.permute.xlu1 %1796 }
 0x42b   :  { %4208 = vmatprep.subr.bf16.mxu0 %v664_v25  ;;  %v4228_v30 = vpop.f32.mrb[12].mxu1 }
 0x42c   :  { %v846_v31 = vpop.f32.mrb[13].mxu1 }
 0x42d   :  { %v4229_v32 = vpop.f32.mrb[14].mxu1 }
 0x42e   :  { %v867_v34 = vpack.c.bf16 %v4229_v32, %v4228_v30  ;;  %4209 = vmatpush3.bf16.msra.mxu0 %v664_v25  ;;  %v849_v36 = vpop.f32.mrb[15].mxu1  ;;  %v4710_v25 = vld [vmem:[%s5621_s8 + $0x78] sm:$0xff]  }
 0x42f   :  { %v866_v39 = vpack.c.bf16 %v849_v36, %v846_v31  ;;  %4214 = vmatprep.subr.bf16.mxu0 %v590_v28 }
 0x431   :  { %4211 = vmatmul.mubr.msk.bf16.vlgmr.msra.gmra.mrb[8].mxu0 %vm190_vm1, %v4696_v33 }
 0x432   :  { %4215 = vmatpush3.bf16.msra.mxu0 %v590_v28  ;;  %4218 = vmatprep.mubr.msk.bf16.mxu0 %vm190_vm1, %v4697_v38  ;;  %v1792_v28 = vpop.permute.xlu0 %1791 }
 0x433   :  { %4216 = vmatprep.subr.bf16.mxu0 %v591_v24  ;;  %v4244_v40 = vpop.f32.mrb[16].mxu1 }
 0x434   :  { %v988_v41 = vpop.f32.mrb[17].mxu1 }
 0x435   :  { %v4245_v42 = vpop.f32.mrb[18].mxu1 }
 0x436   :  { %v1009_v43 = vpack.c.bf16 %v4245_v42, %v4244_v40  ;;  %4217 = vmatpush3.bf16.msra.mxu0 %v591_v24  ;;  %v991_v44 = vpop.f32.mrb[19].mxu1  ;;  %v4709_v24 = vld [vmem:[%s5621_s8 + $0x70] sm:$0xff]   ;;  %v1802_v30 = vpop.permute.xlu0 %1801 }
 0x437   :  { %v1008_v45 = vpack.c.bf16 %v991_v44, %v988_v41  ;;  %4230 = vmatprep.subr.bf16.mxu0 %v866_v39 }
 0x43b   :  { %v4260_v48 = vpop.f32.mrb[20].mxu1 }
 0x43c   :  { %v1130_v49 = vpop.f32.mrb[21].mxu1 }
 0x43d   :  { %4219 = vmatmul.mubr.msk.bf16.vlgmr.msra.gmra.mrb[8].mxu0 %vm190_vm1, %v4698_v46  ;;  %v4261_v50 = vpop.f32.mrb[22].mxu1 }
 0x43e   :  { %4231 = vmatpush3.bf16.msra.mxu0 %v866_v39  ;;  %v1151_v51 = vpack.c.bf16 %v4261_v50, %v4260_v48  ;;  %v1133_v52 = vpop.f32.mrb[23].mxu1  ;;  %4234 = vmatprep.mubr.msk.bf16.mxu0 %vm190_vm1, %v4699_v47 }
 0x43f   :  { %4232 = vmatprep.subr.bf16.mxu0 %v867_v34  ;;  %v1150_v53 = vpack.c.bf16 %v1133_v52, %v1130_v49  ;;  %v4713_v52 = vld [vmem:[#allocation7] sm:$0xff]  }
 0x442   :  { %4233 = vmatpush3.bf16.msra.mxu0 %v867_v34  ;;  %v1807_v34 = vpop.permute.xlu1 %1806 }
 0x443   :  { %4246 = vmatprep.subr.bf16.mxu0 %v1008_v45  ;;  %v4276_v54 = vpop.f32.mrb[24].mxu1 }
 0x444   :  { %v1272_v55 = vpop.f32.mrb[25].mxu1 }
 0x445   :  { %v4277_v56 = vpop.f32.mrb[26].mxu1 }
 0x446   :  { %v1293_v58 = vpack.c.bf16 %v4277_v56, %v4276_v54  ;;  %v1275_v59 = vpop.f32.mrb[27].mxu1 }
 0x447   :  { %v1292_v61 = vpack.c.bf16 %v1275_v59, %v1272_v55 }
 0x449   :  { %4235 = vmatmul.mubr.msk.bf16.vlgmr.msra.gmra.mrb[8].mxu0 %vm190_vm1, %v4700_v57 }
 0x44a   :  { %4247 = vmatpush3.bf16.msra.mxu0 %v1008_v45  ;;  %4250 = vmatprep.mubr.msk.bf16.mxu0 %vm190_vm1, %v4701_v60 }
 0x44b   :  { %4248 = vmatprep.subr.bf16.mxu0 %v1009_v43  ;;  %v4292_v62 = vpop.f32.mrb[28].mxu1 }
 0x44c   :  { %v1414_v63 = vpop.f32.mrb[29].mxu1 }
 0x44d   :  { %v4293_v1 = vpop.f32.mrb[30].mxu1 }
 0x44e   :  { %4249 = vmatpush3.bf16.msra.mxu0 %v1009_v43  ;;  %v1435_v2 = vpack.c.bf16 %v4293_v1, %v4292_v62  ;;  %v1417_v3 = vpop.f32.mrb[31].mxu1  ;;  %v4715_v62 = vld [vmem:[%s5625_s12 + $0x8] sm:$0xff]  }
 0x44f   :  { %4262 = vmatprep.subr.bf16.mxu0 %v1150_v53  ;;  %v1434_v4 = vpack.c.bf16 %v1417_v3, %v1414_v63  ;;  %v4717_v3 = vld [vmem:[#allocation10] sm:$0xff]  }
 0x453   :  { %v4308_v7 = vpop.f32.mrb[32].mxu1 }
 0x454   :  { %v1556_v8 = vpop.f32.mrb[33].mxu1 }
 0x455   :  { %4251 = vmatmul.mubr.msk.bf16.vlgmr.msra.gmra.mrb[8].mxu0 %vm190_vm1, %v4702_v5  ;;  %v4309_v9 = vpop.f32.mrb[34].mxu1  ;;  %v4721_v5 = vld [vmem:[#allocation10 + $0x10] sm:$0xff]  }
 0x456   :  { %4263 = vmatpush3.bf16.msra.mxu0 %v1150_v53  ;;  %v1577_v10 = vpack.c.bf16 %v4309_v9, %v4308_v7  ;;  %v1559_v11 = vpop.f32.mrb[35].mxu1  ;;  %4266 = vmatprep.mubr.msk.bf16.mxu0 %vm190_vm1, %v4703_v6  ;;  %v4714_v53 = vld [vmem:[%s5625_s12] sm:$0xff]   ;;  %v4723_v6 = vld [vmem:[#allocation10 + $0x18] sm:$0xff]   ;;  %v4725_v7 = vld [vmem:[#allocation10 + $0x20] sm:$0xff]  }
 0x457   :  { %4264 = vmatprep.subr.bf16.mxu0 %v1151_v51  ;;  %v1576_v12 = vpack.c.bf16 %v1559_v11, %v1556_v8 }
 0x45a   :  { %4265 = vmatpush3.bf16.msra.mxu0 %v1151_v51 }
 0x45b   :  { %4278 = vmatprep.subr.bf16.mxu0 %v1292_v61  ;;  %v4324_v13 = vpop.f32.mrb[36].mxu1 }
 0x45c   :  { %v1698_v14 = vpop.f32.mrb[37].mxu1 }
 0x45d   :  { %v4325_v15 = vpop.f32.mrb[38].mxu1 }
 0x45e   :  { %v1719_v17 = vpack.c.bf16 %v4325_v15, %v4324_v13  ;;  %v1701_v18 = vpop.f32.mrb[39].mxu1  ;;  %v4718_v15 = vld [vmem:[#allocation10 + $0x40] sm:$0xff]  }
 0x45f   :  { %v1718_v20 = vpack.c.bf16 %v1701_v18, %v1698_v14  ;;  %v4716_v14 = vld [vmem:[%s5627_s14] sm:$0xff]   ;;  %v4724_v18 = vld [vmem:[#allocation10 + $0x58] sm:$0xff]  }
 0x461   :  { %4267 = vmatmul.mubr.msk.bf16.vlgmr.msra.gmra.mrb[8].mxu0 %vm190_vm1, %v4704_v16  ;;  %v4720_v16 = vld [vmem:[#allocation10 + $0x48] sm:$0xff]  }
 0x462   :  { %4279 = vmatpush3.bf16.msra.mxu0 %v1292_v61  ;;  %4282 = vmatprep.mubr.msk.bf16.mxu0 %vm190_vm1, %v4705_v19  ;;  %v1874_v61 = vld [vmem:[#allocation9] sm:$0xf]  ;;  %v4726_v19 = vld [vmem:[#allocation10 + $0x60] sm:$0xff]  }
 0x463   :  { %4280 = vmatprep.subr.bf16.mxu0 %v1293_v58 }
 0x466   :  { %4281 = vmatpush3.bf16.msra.mxu0 %v1293_v58 }
 0x467   :  { %4294 = vmatprep.subr.bf16.mxu0 %v1434_v4 }
 0x46d   :  { %4283 = vmatmul.mubr.msk.bf16.vlgmr.msra.gmra.mrb[8].mxu0 %vm190_vm1, %v4706_v21  ;;  %v4728_v21 = vld [vmem:[#allocation10 + $0x68] sm:$0xff]  }
 0x46e   :  { %4295 = vmatpush3.bf16.msra.mxu0 %v1434_v4  ;;  %4298 = vmatprep.mubr.msk.bf16.mxu0 %vm190_vm1, %v4707_v22  ;;  %v4719_v4 = vld [vmem:[#allocation10 + $0x8] sm:$0xff]   ;;  %v4729_v22 = vld [vmem:[#allocation10 + $0x30] sm:$0xff]  }
 0x46f   :  { %4296 = vmatprep.subr.bf16.mxu0 %v1435_v2 }
 0x472   :  { %4297 = vmatpush3.bf16.msra.mxu0 %v1435_v2 }
 0x473   :  { %4310 = vmatprep.subr.bf16.mxu0 %v1576_v12 }
 0x479   :  { %4299 = vmatmul.mubr.msk.bf16.vlgmr.msra.gmra.mrb[8].mxu0 %vm190_vm1, %v4708_v23  ;;  %v4730_v23 = vld [vmem:[#allocation10 + $0x70] sm:$0xff]  }
 0x47a   :  { %4311 = vmatpush3.bf16.msra.mxu0 %v1576_v12  ;;  %4314 = vmatprep.mubr.msk.bf16.mxu0 %vm190_vm1, %v4709_v24  ;;  %v4731_v24 = vld [vmem:[#allocation10 + $0x38] sm:$0xff]  }
 0x47b   :  { %4312 = vmatprep.subr.bf16.mxu0 %v1577_v10 }
 0x47e   :  { %4313 = vmatpush3.bf16.msra.mxu0 %v1577_v10 }
 0x47f   :  { %4326 = vmatprep.subr.bf16.mxu0 %v1718_v20 }
 0x485   :  { %4315 = vmatmul.mubr.msk.bf16.vlgmr.msra.gmra.mrb[8].mxu0 %vm190_vm1, %v4710_v25  ;;  %v4732_v25 = vld [vmem:[#allocation10 + $0x78] sm:$0xff]  }
 0x486   :  { %4327 = vmatpush3.bf16.msra.mxu0 %v1718_v20  ;;  %4330 = vmatprep.mubr.msk.bf16.mxu0 %vm190_vm1, %v4711_v26  ;;  %v4727_v20 = vld [vmem:[#allocation10 + $0x28] sm:$0xff]   ;;  %v1990_v26 = vpop.permute.xlu0 %1989 }
 0x487   :  { %4328 = vmatprep.subr.bf16.mxu0 %v1719_v17 }
 0x48a   :  { %4329 = vmatpush3.bf16.msra.mxu0 %v1719_v17  ;;  %v4722_v17 = vld [vmem:[#allocation10 + $0x50] sm:$0xff]  }
 0x48b   :  { %4348 = vmatprep.subr.bf16.mxu0 %v5003_v0 }
 0x491   :  { %4331 = vmatmul.mubr.msk.bf16.vlgmr.msra.gmra.mrb[8].mxu0 %vm190_vm1, %v4712_v27 }
 0x492   :  { %4352 = vmatprep.mubr.msk.bf16.mxu0 %vm5004_vm0, %v5003_v0  ;;  %4349 = vmatpush3.bf16.msra.mxu0 %v4714_v53  ;;  %v4735_v53 = vld [vmem:[#allocation10 + $0x80] sm:$0xff]  }
 0x493   :  { %4350 = vmatprep.subr.bf16.mxu0 %v5003_v0 }
 0x496   :  { %4351 = vmatpush3.bf16.msra.mxu0 %v4715_v62 }
 0x497   :  { %4362 = vmatprep.subr.bf16.mxu0 %v5003_v0 }
 0x564   :  { %v4332_v31 = vpop.f32.mrb[8].mxu0 }
 0x565   :  { %v1811_v32 = vadd.f32 %v4332_v31, %v1802_v30  ;;  %v1770_v33 = vpop.f32.mrb[9].mxu0  ;;  %v1995_v30 = vpop.permute.xlu1 %1994 }
 0x566   :  { %v1809_v36 = vadd.f32 %v1792_v28, %v1770_v33  ;;  %v4333_v38 = vpop.f32.mrb[10].mxu0 }
 0x567   :  { %v1815_v39 = vmul.f32 0.2, %v1811_v32  ;;  %v1812_v40 = vadd.f32 %v4333_v38, %v1807_v34  ;;  %v1773_v41 = vpop.f32.mrb[11].mxu0 }
 0x568   :  { %v1813_v42 = vmul.f32 0.2, %v1809_v36  ;;  %v1810_v43 = vadd.f32 %v1797_v29, %v1773_v41 }
 0x569   :  { %v1816_v44 = vmul.f32 0.2, %v1812_v40  ;;  %v1819_v46 = vmax.f32 %v1811_v32, %v1815_v39 }
 0x56a   :  { %v1814_v45 = vmul.f32 0.2, %v1810_v43  ;;  %v1817_v48 = vmax.f32 %v1809_v36, %v1813_v42 }
 0x56b   :  { %v1820_v47 = vmax.f32 %v1812_v40, %v1816_v44 }
 0x56c   :  { %v1818_v49 = vmax.f32 %v1810_v43, %v1814_v45 }
 0x56d   :  { %v1822_v50 = vpack.c.bf16 %v1820_v47, %v1819_v46 }
 0x56e   :  { %v1821_v51 = vpack.c.bf16 %v1818_v49, %v1817_v48 }
 0x570   :  { %4335 = vmatpush3.bf16.msra.mxu1 %v1821_v51  ;;  %v4733_v51 = vld [vmem:[%s5629_s16 + $0x8] sm:$0xff]  }
 0x571   :  { %4336 = vmatprep.subr.bf16.mxu1 %v5003_v0 }
 0x574   :  { %4337 = vmatpush3.bf16.msra.mxu1 %v1822_v50 }
 0x575   :  { %4342 = vmatprep.subr.bf16.mxu1 %v5003_v0 }
 0x577   :  { %4339 = vmatmul.mubr.msk.bf16.vlgmr.msra.gmra.mrb[40].mxu1 %vm190_vm1, %v4713_v52  ;;  %v4734_v52 = vld [vmem:[%s5629_s16] sm:$0xff]  }
 0x578   :  { %4344 = vmatprep.mubr.msk.bf16.mxu1 %vm5004_vm0, %v5003_v0 }
 0x64a   :  { %v1865_v54 = vpop.f32.mrb[40].mxu1 }
 0x64b   :  { %v4340_v55 = vpop.f32.mrb[41].mxu1  ;;  %v1872_v57 = vadd.f32 %v1865_v54, %v5296_v37  ;;  %v4736_v54 = vld [vmem:[#allocation10 + $0x88] sm:$0xff]  }
 0x64c   :  { %v1868_v56 = vpop.f32.mrb[42].mxu1  ;;  %v4737_v55 = vld [vmem:[#allocation10 + $0x90] sm:$0xff]  }
 0x64d   :  { %v1873_v58 = vadd.f32 %v1868_v56, %v5294_v35  ;;  %v4341_v59 = vpop.f32.mrb[43].mxu1  ;;  %v4738_v56 = vld [vmem:[#allocation10 + $0x98] sm:$0xff]  }
 0x64e   :  { %v4741_v59 = vld [vmem:[#allocation10 + $0xb0] sm:$0xff]  }
 0x64f   :  { %v1875_v60 = vpack.c.bf16 %v1873_v58, %v1872_v57  ;;  %v4739_v57 = vld [vmem:[#allocation10 + $0xa0] sm:$0xff]   ;;  %v4740_v58 = vld [vmem:[#allocation10 + $0xa8] sm:$0xff]  }
 0x651   :  { %4343 = vmatpush3.bf16.msra.mxu1 %v1875_v60  ;;  %v4742_v60 = vld [vmem:[#allocation10 + $0xb8] sm:$0xff]  }
 0x652   :  { %4356 = vmatprep.subr.bf16.mxu1 %v5003_v0 }
 0x654   :  { %4345 = vmatmul.mubr.msk.bf16.vlgmr.msra.gmra.mrb[44].mxu1 %vm321_vm4, %v1874_v61 }
 0x655   :  { %4358 = vmatprep.mubr.msk.bf16.mxu1 %vm5004_vm0, %v5003_v0 }
 0x727   :  { %v1913_v37 = vpop.f32.mrb[44].mxu1 }
 0x728   :  { %v1923_v35 = vpack.c.bf16 %v1913_v37, %v1913_v37  ;;  %v4346_v63 = vpop.f32.mrb[45].mxu1 }
 0x729   :  { %v1916_v1 = vpop.f32.mrb[46].mxu1 }
 0x72a   :  { %v4347_v2 = vpop.f32.mrb[47].mxu1  ;;  %4353 = vmatmul.mubr.msk.bf16.vlgmr.msra.gmra.mrb[12].mxu0 %vm190_vm1, %v1923_v35 }
 0x72b   :  { %4378 = vmatprep.mubr.msk.bf16.mxu0 %vm5004_vm0, %v5003_v0  ;;  %4363 = vmatpush3.bf16.msra.mxu0 %v4717_v3 }
 0x72c   :  { %4364 = vmatprep.subr.bf16.mxu0 %v5003_v0 }
 0x72f   :  { %4365 = vmatpush3.bf16.msra.mxu0 %v4719_v4 }
 0x730   :  { %4366 = vmatprep.subr.bf16.mxu0 %v5003_v0 }
 0x733   :  { %4367 = vmatpush3.bf16.msra.mxu0 %v4721_v5 }
 0x734   :  { %4368 = vmatprep.subr.bf16.mxu0 %v5003_v0 }
 0x737   :  { %4369 = vmatpush3.bf16.msra.mxu0 %v4723_v6 }
 0x738   :  { %4370 = vmatprep.subr.bf16.mxu0 %v5003_v0 }
 0x73b   :  { %4371 = vmatpush3.bf16.msra.mxu0 %v4725_v7 }
 0x73c   :  { %4372 = vmatprep.subr.bf16.mxu0 %v5003_v0 }
 0x73f   :  { %4373 = vmatpush3.bf16.msra.mxu0 %v4727_v20  ;;  %v4751_v20 = vld [vmem:[#allocation10 + $0xf8] sm:$0xff]  }
 0x740   :  { %4374 = vmatprep.subr.bf16.mxu0 %v5003_v0 }
 0x743   :  { %4375 = vmatpush3.bf16.msra.mxu0 %v4729_v22 }
 0x744   :  { %4376 = vmatprep.subr.bf16.mxu0 %v5003_v0 }
 0x747   :  { %4377 = vmatpush3.bf16.msra.mxu0 %v4731_v24 }
 0x748   :  { %4402 = vmatprep.subr.bf16.mxu0 %v5003_v0 }
 0x7fd   :  { %v5427_v8 = vpop.f32.mrb[12].mxu0 }
 0x7fe   :  { %v1986_v9 = vpack.c.bf16 %v5427_v8, %v5427_v8  ;;  %v4354_v10 = vpop.f32.mrb[13].mxu0 }
 0x7ff   :  { %v1976_v11 = vpop.f32.mrb[14].mxu0 }
 0x800   :  { %v4355_v12 = vpop.f32.mrb[15].mxu0  ;;  %v2008_v13 = vsel %vm2006_vm5, %v1986_v9, 0 }
 0x801   :  { %4357 = vmatpush3.bf16.msra.mxu1 %v2008_v13  ;;  %v4743_v12 = vld [vmem:[%s5629_s16 + $0x10] sm:$0xff]  }
 0x802   :  { %4382 = vmatprep.subr.bf16.mxu1 %v5003_v0  ;;  %v4744_v13 = vld [vmem:[#allocation10 + $0xc0] sm:$0xff]  }
 0x804   :  { %4359 = vmatmul.mubr.msk.bf16.vlgmr.msra.gmra.mrb[48].mxu1 %vm2002_vm6, %v4716_v14  ;;  %v4745_v14 = vld [vmem:[#allocation10 + $0xc8] sm:$0xff]  }
 0x805   :  { %4383 = vmatpush3.bf16.msra.mxu1 %v4718_v15  ;;  %4398 = vmatprep.mubr.msk.bf16.mxu1 %vm5004_vm0, %v5003_v0  ;;  %v4746_v15 = vld [vmem:[#allocation10 + $0xd0] sm:$0xff]  }
 0x806   :  { %4384 = vmatprep.subr.bf16.mxu1 %v5003_v0 }
 0x809   :  { %4385 = vmatpush3.bf16.msra.mxu1 %v4720_v16  ;;  %v4747_v16 = vld [vmem:[#allocation10 + $0xd8] sm:$0xff]  }
 0x80a   :  { %4386 = vmatprep.subr.bf16.mxu1 %v5003_v0 }
 0x80d   :  { %4387 = vmatpush3.bf16.msra.mxu1 %v4722_v17  ;;  %v4748_v17 = vld [vmem:[#allocation10 + $0xe0] sm:$0xff]  }
 0x80e   :  { %4388 = vmatprep.subr.bf16.mxu1 %v5003_v0 }
 0x811   :  { %4389 = vmatpush3.bf16.msra.mxu1 %v4724_v18  ;;  %v4749_v18 = vld [vmem:[#allocation10 + $0xe8] sm:$0xff]  }
 0x812   :  { %4390 = vmatprep.subr.bf16.mxu1 %v5003_v0 }
 0x815   :  { %4391 = vmatpush3.bf16.msra.mxu1 %v4726_v19  ;;  %v4750_v19 = vld [vmem:[#allocation10 + $0xf0] sm:$0xff]  }
 0x816   :  { %4392 = vmatprep.subr.bf16.mxu1 %v5003_v0 }
 0x819   :  { %4393 = vmatpush3.bf16.msra.mxu1 %v4728_v21 }
 0x81a   :  { %4394 = vmatprep.subr.bf16.mxu1 %v5003_v0 }
 0x81d   :  { %4395 = vmatpush3.bf16.msra.mxu1 %v4730_v23 }
 0x81e   :  { %4396 = vmatprep.subr.bf16.mxu1 %v5003_v0 }
 0x821   :  { %4397 = vmatpush3.bf16.msra.mxu1 %v4732_v25 }
 0x822   :  { %4408 = vmatprep.subr.bf16.mxu1 %v5003_v0 }
 0x8d7   :  { %v2044_v27 = vpop.f32.mrb[48].mxu1 }
 0x8d8   :  { %v2045_v28 = vadd.f32 %v2044_v27, %v1990_v26  ;;  %v4360_v29 = vpop.f32.mrb[49].mxu1 }
 0x8d9   :  { %v2047_v31 = vpop.f32.mrb[50].mxu1 }
 0x8da   :  { %v2051_v32 = vmul.f32 0.2, %v2045_v28  ;;  %v2048_v33 = vadd.f32 %v2047_v31, %v1995_v30  ;;  %v4361_v34 = vpop.f32.mrb[51].mxu1 }
 0x8db   :  { %v4754_v34 = vld [vmem:[#allocation10 + $0x108] sm:$0xff]  }
 0x8dc   :  { %v2052_v36 = vmul.f32 0.2, %v2048_v33  ;;  %v2053_v38 = vmax.f32 %v2045_v28, %v2051_v32  ;;  %v4752_v32 = vld [vmem:[%s5629_s16 + $0x18] sm:$0xff]  }
 0x8de   :  { %v2054_v39 = vmax.f32 %v2048_v33, %v2052_v36  ;;  %v4753_v33 = vld [vmem:[#allocation10 + $0x100] sm:$0xff]   ;;  %v4755_v36 = vld [vmem:[#allocation10 + $0x110] sm:$0xff]  }
 0x8e0   :  { %v5450_v40 = vpack.c.bf16 %v2054_v39, %v2053_v38  ;;  %v4756_v38 = vld [vmem:[#allocation10 + $0x118] sm:$0xff]   ;;  %v4757_v39 = vld [vmem:[#allocation10 + $0x120] sm:$0xff]  }
 0x8e2   :  { %4379 = vmatmul.mubr.bf16.vlgmr.msra.gmra.mrb[16].mxu0 %v5450_v40  ;;  %4399 = vmatmul.mubr.bf16.vlgmr.msra.gmra.mrb[52].mxu1 %v5450_v40 }
 0x8e3   :  { %4404 = vmatprep.mubr.msk.bf16.mxu0 %vm5004_vm0, %v5003_v0  ;;  %4410 = vmatprep.mubr.msk.bf16.mxu1 %vm5004_vm0, %v5003_v0 }
 0x9b5   :  { %v2154_v41 = vpop.f32.mrb[16].mxu0  ;;  %v2263_v42 = vpop.f32.mrb[52].mxu1 }
 0x9b6   :  { %v4380_v43 = vpop.f32.mrb[17].mxu0  ;;  %v4400_v44 = vpop.f32.mrb[53].mxu1 }
 0x9b7   :  { %v2157_v45 = vpop.f32.mrb[18].mxu0  ;;  %v2266_v46 = vpop.f32.mrb[54].mxu1  ;;  %v4760_v43 = vld [vmem:[#allocation10 + $0x138] sm:$0xff]  }
 0x9b8   :  { %v2163_v47 = vpack.c.bf16 %v2157_v45, %v2154_v41  ;;  %v2273_v48 = vpack.c.bf16 %v2266_v46, %v2263_v42  ;;  %v4381_v49 = vpop.f32.mrb[19].mxu0  ;;  %v4401_v50 = vpop.f32.mrb[55].mxu1  ;;  %v4758_v41 = vld [vmem:[#allocation10 + $0x128] sm:$0xff]   ;;  %v4759_v42 = vld [vmem:[#allocation10 + $0x130] sm:$0xff]  }
 0x9ba   :  { %4403 = vmatpush3.bf16.msra.mxu0 %v2273_v48  ;;  %4409 = vmatpush3.bf16.msra.mxu1 %v2163_v47 }
 0x9bb   :  { %4414 = vmatprep.subr.bf16.mxu0 %v5003_v0  ;;  %4434 = vmatprep.subr.bf16.mxu1 %v5003_v0 }
 0x9bd   :  { %4405 = vmatmul.mubr.msk.bf16.vlgmr.msra.gmra.mrb[20].mxu0 %vm321_vm4, %v4733_v51  ;;  %4411 = vmatmul.mubr.msk.bf16.vlgmr.msra.gmra.mrb[56].mxu1 %vm321_vm4, %v4734_v52 }
 0x9be   :  { %4415 = vmatpush3.bf16.msra.mxu0 %v4735_v53  ;;  %4430 = vmatprep.mubr.msk.bf16.mxu0 %vm5004_vm0, %v5003_v0 }
 0x9bf   :  { %4416 = vmatprep.subr.bf16.mxu0 %v5003_v0  ;;  %4436 = vmatprep.mubr.msk.bf16.mxu1 %vm5004_vm0, %v5003_v0 }
 0x9c2   :  { %4417 = vmatpush3.bf16.msra.mxu0 %v4736_v54 }
 0x9c3   :  { %4418 = vmatprep.subr.bf16.mxu0 %v5003_v0 }
 0x9c6   :  { %4419 = vmatpush3.bf16.msra.mxu0 %v4737_v55  ;;  %v4761_v55 = vld [vmem:[%s5629_s16 + $0x20] sm:$0xff]  }
 0x9c7   :  { %4420 = vmatprep.subr.bf16.mxu0 %v5003_v0 }
 0x9ca   :  { %4421 = vmatpush3.bf16.msra.mxu0 %v4738_v56  ;;  %v4762_v56 = vld [vmem:[#allocation10 + $0x140] sm:$0xff]  }
 0x9cb   :  { %4422 = vmatprep.subr.bf16.mxu0 %v5003_v0 }
 0x9ce   :  { %4423 = vmatpush3.bf16.msra.mxu0 %v4739_v57  ;;  %v4763_v57 = vld [vmem:[#allocation10 + $0x148] sm:$0xff]  }
 0x9cf   :  { %4424 = vmatprep.subr.bf16.mxu0 %v5003_v0 }
 0x9d2   :  { %4425 = vmatpush3.bf16.msra.mxu0 %v4740_v58  ;;  %v4764_v58 = vld [vmem:[#allocation10 + $0x150] sm:$0xff]  }
 0x9d3   :  { %4426 = vmatprep.subr.bf16.mxu0 %v5003_v0 }
 0x9d6   :  { %4427 = vmatpush3.bf16.msra.mxu0 %v4741_v59  ;;  %v4765_v59 = vld [vmem:[#allocation10 + $0x158] sm:$0xff]  }
 0x9d7   :  { %4428 = vmatprep.subr.bf16.mxu0 %v5003_v0 }
 0x9da   :  { %4429 = vmatpush3.bf16.msra.mxu0 %v4742_v60  ;;  %v4766_v60 = vld [vmem:[#allocation10 + $0x160] sm:$0xff]  }
 0x9db   :  { %4460 = vmatprep.subr.bf16.mxu0 %v5003_v0 }
 0x9dd   :  { %4431 = vmatmul.mubr.bf16.vlgmr.msra.gmra.mrb[24].mxu0 %v5450_v40 }
 0x9de   :  { %4462 = vmatprep.mubr.msk.bf16.mxu0 %vm5004_vm0, %v5003_v0 }
 0xa90   :  { %v2316_v61 = vpop.f32.mrb[20].mxu0  ;;  %v2365_v62 = vpop.f32.mrb[56].mxu1 }
 0xa91   :  { %v2366_v37 = vadd.f32 %v2365_v62, %v2316_v61  ;;  %v4406_v35 = vpop.f32.mrb[21].mxu0  ;;  %v4412_v63 = vpop.f32.mrb[57].mxu1  ;;  %v4767_v61 = vld [vmem:[#allocation10 + $0x168] sm:$0xff]   ;;  %v4768_v62 = vld [vmem:[#allocation10 + $0x170] sm:$0xff]  }
 0xa92   :  { %v2319_v1 = vpop.f32.mrb[22].mxu0  ;;  %v2368_v2 = vpop.f32.mrb[58].mxu1 }
 0xa93   :  { %v2369_v3 = vadd.f32 %v2368_v2, %v2319_v1  ;;  %v4407_v4 = vpop.f32.mrb[23].mxu0  ;;  %v4413_v5 = vpop.f32.mrb[59].mxu1 }
 0xab0   :  { %v2471_v6 = vpop.f32.mrb[24].mxu0 }
 0xab1   :  { %v4432_v7 = vpop.f32.mrb[25].mxu0 }
 0xab2   :  { %v2474_v9 = vpop.f32.mrb[26].mxu0 }
 0xab3   :  { %v2481_v10 = vpack.c.bf16 %v2474_v9, %v2471_v6  ;;  %v4433_v11 = vpop.f32.mrb[27].mxu0 }
 0xab4   :  { %v4770_v11 = vld [vmem:[%s5629_s16 + $0x28] sm:$0xff]  }
 0xab5   :  { %4435 = vmatpush3.bf16.msra.mxu1 %v2481_v10 }
 0xab6   :  { %4440 = vmatprep.subr.bf16.mxu1 %v5003_v0 }
 0xab8   :  { %4437 = vmatmul.mubr.msk.bf16.vlgmr.msra.gmra.mrb[60].mxu1 %vm321_vm4, %v4743_v12  ;;  %v4771_v12 = vld [vmem:[#allocation10 + $0x180] sm:$0xff]  }
 0xab9   :  { %4441 = vmatpush3.bf16.msra.mxu1 %v4744_v13  ;;  %4456 = vmatprep.mubr.msk.bf16.mxu1 %vm5004_vm0, %v5003_v0  ;;  %v4772_v13 = vld [vmem:[#allocation10 + $0x188] sm:$0xff]  }
 0xaba   :  { %4442 = vmatprep.subr.bf16.mxu1 %v5003_v0 }
 0xabd   :  { %4443 = vmatpush3.bf16.msra.mxu1 %v4745_v14  ;;  %v4773_v14 = vld [vmem:[#allocation10 + $0x190] sm:$0xff]  }
 0xabe   :  { %4444 = vmatprep.subr.bf16.mxu1 %v5003_v0 }
 0xac1   :  { %4445 = vmatpush3.bf16.msra.mxu1 %v4746_v15  ;;  %v4774_v15 = vld [vmem:[#allocation10 + $0x198] sm:$0xff]  }
 0xac2   :  { %4446 = vmatprep.subr.bf16.mxu1 %v5003_v0 }
 0xac5   :  { %4447 = vmatpush3.bf16.msra.mxu1 %v4747_v16  ;;  %v4775_v16 = vld [vmem:[#allocation10 + $0x1a0] sm:$0xff]  }
 0xac6   :  { %4448 = vmatprep.subr.bf16.mxu1 %v5003_v0 }
 0xac9   :  { %4449 = vmatpush3.bf16.msra.mxu1 %v4748_v17  ;;  %v4776_v17 = vld [vmem:[#allocation10 + $0x1a8] sm:$0xff]  }
 0xaca   :  { %4450 = vmatprep.subr.bf16.mxu1 %v5003_v0 }
 0xacd   :  { %4451 = vmatpush3.bf16.msra.mxu1 %v4749_v18  ;;  %v4777_v18 = vld [vmem:[#allocation10 + $0x1b0] sm:$0xff]  }
 0xace   :  { %4452 = vmatprep.subr.bf16.mxu1 %v5003_v0 }
 0xad1   :  { %4453 = vmatpush3.bf16.msra.mxu1 %v4750_v19  ;;  %v4778_v19 = vld [vmem:[#allocation10 + $0x1b8] sm:$0xff]  }
 0xad2   :  { %4454 = vmatprep.subr.bf16.mxu1 %v5003_v0 }
 0xad5   :  { %4455 = vmatpush3.bf16.msra.mxu1 %v4751_v20 }
 0xad6   :  { %4486 = vmatprep.subr.bf16.mxu1 %v5003_v0 }
 0xad8   :  { %4457 = vmatmul.mubr.bf16.vlgmr.msra.gmra.mrb[64].mxu1 %v5450_v40 }
 0xad9   :  { %4488 = vmatprep.mubr.msk.bf16.mxu1 %vm5004_vm0, %v5003_v0 }
 0xb8b   :  { %v2524_v21 = vpop.f32.mrb[60].mxu1 }
 0xb8c   :  { %v2531_v22 = vadd.f32 %v2524_v21, %v2366_v37  ;;  %v4438_v23 = vpop.f32.mrb[61].mxu1  ;;  %v4769_v37 = vld [vmem:[#allocation10 + $0x178] sm:$0xff]  }
 0xb8d   :  { %v2527_v24 = vpop.f32.mrb[62].mxu1 }
 0xb8e   :  { %v2532_v25 = vadd.f32 %v2527_v24, %v2369_v3  ;;  %v4439_v26 = vpop.f32.mrb[63].mxu1 }
 0xbab   :  { %v2632_v27 = vpop.f32.mrb[64].mxu1 }
 0xbac   :  { %v4458_v28 = vpop.f32.mrb[65].mxu1 }
 0xbad   :  { %v2635_v29 = vpop.f32.mrb[66].mxu1 }
 0xbae   :  { %v2642_v30 = vpack.c.bf16 %v2635_v29, %v2632_v27  ;;  %v4459_v31 = vpop.f32.mrb[67].mxu1 }
 0xbaf   :  { %v4779_v31 = vld [vmem:[%s5629_s16 + $0x30] sm:$0xff]  }
 0xbb0   :  { %4461 = vmatpush3.bf16.msra.mxu0 %v2642_v30 }
 0xbb1   :  { %4466 = vmatprep.subr.bf16.mxu0 %v5003_v0 }
 0xbb3   :  { %4463 = vmatmul.mubr.msk.bf16.vlgmr.msra.gmra.mrb[28].mxu0 %vm321_vm4, %v4752_v32  ;;  %v4780_v32 = vld [vmem:[#allocation10 + $0x1c0] sm:$0xff]  }
 0xbb4   :  { %4467 = vmatpush3.bf16.msra.mxu0 %v4753_v33  ;;  %4482 = vmatprep.mubr.msk.bf16.mxu0 %vm5004_vm0, %v5003_v0  ;;  %v4781_v33 = vld [vmem:[#allocation10 + $0x1c8] sm:$0xff]  }
 0xbb5   :  { %4468 = vmatprep.subr.bf16.mxu0 %v5003_v0 }
 0xbb8   :  { %4469 = vmatpush3.bf16.msra.mxu0 %v4754_v34  ;;  %v4782_v34 = vld [vmem:[#allocation10 + $0x1d0] sm:$0xff]  }
 0xbb9   :  { %4470 = vmatprep.subr.bf16.mxu0 %v5003_v0 }
 0xbbc   :  { %4471 = vmatpush3.bf16.msra.mxu0 %v4755_v36  ;;  %v4783_v36 = vld [vmem:[#allocation10 + $0x1d8] sm:$0xff]  }
 0xbbd   :  { %4472 = vmatprep.subr.bf16.mxu0 %v5003_v0 }
 0xbc0   :  { %4473 = vmatpush3.bf16.msra.mxu0 %v4756_v38  ;;  %v4784_v38 = vld [vmem:[#allocation10 + $0x1e0] sm:$0xff]  }
 0xbc1   :  { %4474 = vmatprep.subr.bf16.mxu0 %v5003_v0 }
 0xbc4   :  { %4475 = vmatpush3.bf16.msra.mxu0 %v4757_v39  ;;  %v4785_v39 = vld [vmem:[#allocation10 + $0x1e8] sm:$0xff]  }
 0xbc5   :  { %4476 = vmatprep.subr.bf16.mxu0 %v5003_v0 }
 0xbc8   :  { %4477 = vmatpush3.bf16.msra.mxu0 %v4758_v41  ;;  %v4786_v41 = vld [vmem:[#allocation10 + $0x1f0] sm:$0xff]  }
 0xbc9   :  { %4478 = vmatprep.subr.bf16.mxu0 %v5003_v0 }
 0xbcc   :  { %4479 = vmatpush3.bf16.msra.mxu0 %v4759_v42  ;;  %v4787_v42 = vld [vmem:[#allocation10 + $0x1f8] sm:$0xff]  }
 0xbcd   :  { %4480 = vmatprep.subr.bf16.mxu0 %v5003_v0 }
 0xbd0   :  { %4481 = vmatpush3.bf16.msra.mxu0 %v4760_v43 }
 0xbd1   :  { %4512 = vmatprep.subr.bf16.mxu0 %v5003_v0 }
 0xbd3   :  { %4483 = vmatmul.mubr.bf16.vlgmr.msra.gmra.mrb[32].mxu0 %v5450_v40 }
 0xbd4   :  { %4514 = vmatprep.mubr.msk.bf16.mxu0 %vm5004_vm0, %v5003_v0 }
 0xc86   :  { %v2685_v44 = vpop.f32.mrb[28].mxu0 }
 0xc87   :  { %v2692_v45 = vadd.f32 %v2685_v44, %v2531_v22  ;;  %v4464_v46 = vpop.f32.mrb[29].mxu0 }
 0xc88   :  { %v2688_v47 = vpop.f32.mrb[30].mxu0 }
 0xc89   :  { %v2693_v48 = vadd.f32 %v2688_v47, %v2532_v25  ;;  %v4465_v49 = vpop.f32.mrb[31].mxu0 }
 0xca6   :  { %v2793_v50 = vpop.f32.mrb[32].mxu0 }
 0xca7   :  { %v4484_v51 = vpop.f32.mrb[33].mxu0 }
 0xca8   :  { %v2796_v52 = vpop.f32.mrb[34].mxu0 }
 0xca9   :  { %v2803_v53 = vpack.c.bf16 %v2796_v52, %v2793_v50  ;;  %v4485_v54 = vpop.f32.mrb[35].mxu0 }
 0xcaa   :  { %v4788_v54 = vld [vmem:[%s5629_s16 + $0x38] sm:$0xff]  }
 0xcab   :  { %4487 = vmatpush3.bf16.msra.mxu1 %v2803_v53 }
 0xcac   :  { %4492 = vmatprep.subr.bf16.mxu1 %v5003_v0 }
 0xcae   :  { %4489 = vmatmul.mubr.msk.bf16.vlgmr.msra.gmra.mrb[68].mxu1 %vm321_vm4, %v4761_v55  ;;  %v4789_v55 = vld [vmem:[#allocation10 + $0x200] sm:$0xff]  }
 0xcaf   :  { %4493 = vmatpush3.bf16.msra.mxu1 %v4762_v56  ;;  %4508 = vmatprep.mubr.msk.bf16.mxu1 %vm5004_vm0, %v5003_v0  ;;  %v4790_v56 = vld [vmem:[#allocation10 + $0x208] sm:$0xff]  }
 0xcb0   :  { %4494 = vmatprep.subr.bf16.mxu1 %v5003_v0 }
 0xcb3   :  { %4495 = vmatpush3.bf16.msra.mxu1 %v4763_v57  ;;  %v4791_v57 = vld [vmem:[#allocation10 + $0x210] sm:$0xff]  }
 0xcb4   :  { %4496 = vmatprep.subr.bf16.mxu1 %v5003_v0 }
 0xcb7   :  { %4497 = vmatpush3.bf16.msra.mxu1 %v4764_v58  ;;  %v4792_v58 = vld [vmem:[#allocation10 + $0x218] sm:$0xff]  }
 0xcb8   :  { %4498 = vmatprep.subr.bf16.mxu1 %v5003_v0 }
 0xcbb   :  { %4499 = vmatpush3.bf16.msra.mxu1 %v4765_v59  ;;  %v4793_v59 = vld [vmem:[#allocation10 + $0x220] sm:$0xff]  }
 0xcbc   :  { %4500 = vmatprep.subr.bf16.mxu1 %v5003_v0 }
 0xcbf   :  { %4501 = vmatpush3.bf16.msra.mxu1 %v4766_v60  ;;  %v4794_v60 = vld [vmem:[#allocation10 + $0x228] sm:$0xff]  }
 0xcc0   :  { %4502 = vmatprep.subr.bf16.mxu1 %v5003_v0 }
 0xcc3   :  { %4503 = vmatpush3.bf16.msra.mxu1 %v4767_v61  ;;  %v4795_v61 = vld [vmem:[#allocation10 + $0x230] sm:$0xff]  }
 0xcc4   :  { %4504 = vmatprep.subr.bf16.mxu1 %v5003_v0 }
 0xcc7   :  { %4505 = vmatpush3.bf16.msra.mxu1 %v4768_v62  ;;  %v4796_v62 = vld [vmem:[#allocation10 + $0x238] sm:$0xff]  }
 0xcc8   :  { %4506 = vmatprep.subr.bf16.mxu1 %v5003_v0 }
 0xccb   :  { %4507 = vmatpush3.bf16.msra.mxu1 %v4769_v37 }
 0xccc   :  { %4538 = vmatprep.subr.bf16.mxu1 %v5003_v0 }
 0xcce   :  { %4509 = vmatmul.mubr.bf16.vlgmr.msra.gmra.mrb[72].mxu1 %v5450_v40 }
 0xccf   :  { %4540 = vmatprep.mubr.msk.bf16.mxu1 %vm5004_vm0, %v5003_v0 }
 0xd81   :  { %v2846_v35 = vpop.f32.mrb[68].mxu1 }
 0xd82   :  { %v2853_v63 = vadd.f32 %v2846_v35, %v2692_v45  ;;  %v4490_v1 = vpop.f32.mrb[69].mxu1 }
 0xd83   :  { %v2849_v2 = vpop.f32.mrb[70].mxu1 }
 0xd84   :  { %v2854_v3 = vadd.f32 %v2849_v2, %v2693_v48  ;;  %v4491_v4 = vpop.f32.mrb[71].mxu1 }
 0xda1   :  { %v2954_v5 = vpop.f32.mrb[72].mxu1 }
 0xda2   :  { %v4510_v6 = vpop.f32.mrb[73].mxu1 }
 0xda3   :  { %v2957_v7 = vpop.f32.mrb[74].mxu1 }
 0xda4   :  { %v2964_v9 = vpack.c.bf16 %v2957_v7, %v2954_v5  ;;  %v4511_v10 = vpop.f32.mrb[75].mxu1 }
 0xda5   :  { %v4797_v10 = vld [vmem:[%s5629_s16 + $0x40] sm:$0xff]  }
 0xda6   :  { %4513 = vmatpush3.bf16.msra.mxu0 %v2964_v9 }
 0xda7   :  { %4518 = vmatprep.subr.bf16.mxu0 %v5003_v0 }
 0xda9   :  { %4515 = vmatmul.mubr.msk.bf16.vlgmr.msra.gmra.mrb[36].mxu0 %vm321_vm4, %v4770_v11 }
 0xdaa   :  { %4519 = vmatpush3.bf16.msra.mxu0 %v4771_v12  ;;  %4534 = vmatprep.mubr.msk.bf16.mxu0 %vm5004_vm0, %v5003_v0 }
 0xdab   :  { %4520 = vmatprep.subr.bf16.mxu0 %v5003_v0 }
 0xdae   :  { %4521 = vmatpush3.bf16.msra.mxu0 %v4772_v13  ;;  %v3502_v13 = vpop.permute.xlu0 %3501 }
 0xdaf   :  { %4522 = vmatprep.subr.bf16.mxu0 %v5003_v0 }
 0xdb2   :  { %4523 = vmatpush3.bf16.msra.mxu0 %v4773_v14 }
 0xdb3   :  { %4524 = vmatprep.subr.bf16.mxu0 %v5003_v0 }
 0xdb6   :  { %4525 = vmatpush3.bf16.msra.mxu0 %v4774_v15 }
 0xdb7   :  { %4526 = vmatprep.subr.bf16.mxu0 %v5003_v0 }
 0xdba   :  { %4527 = vmatpush3.bf16.msra.mxu0 %v4775_v16 }
 0xdbb   :  { %4528 = vmatprep.subr.bf16.mxu0 %v5003_v0 }
 0xdbe   :  { %4529 = vmatpush3.bf16.msra.mxu0 %v4776_v17 }
 0xdbf   :  { %4530 = vmatprep.subr.bf16.mxu0 %v5003_v0 }
 0xdc2   :  { %4531 = vmatpush3.bf16.msra.mxu0 %v4777_v18  ;;  %v3507_v18 = vpop.permute.xlu1 %3506 }
 0xdc3   :  { %4532 = vmatprep.subr.bf16.mxu0 %v5003_v0 }
 0xdc6   :  { %4533 = vmatpush3.bf16.msra.mxu0 %v4778_v19 }
 0xdc7   :  { %4564 = vmatprep.subr.bf16.mxu0 %v5003_v0 }
 0xdc9   :  { %4535 = vmatmul.mubr.bf16.vlgmr.msra.gmra.mrb[40].mxu0 %v5450_v40 }
 0xdca   :  { %4566 = vmatprep.mubr.msk.bf16.mxu0 %vm5004_vm0, %v5003_v0 }
 0xe7c   :  { %v3007_v20 = vpop.f32.mrb[36].mxu0 }
 0xe7d   :  { %v3014_v21 = vadd.f32 %v3007_v20, %v2853_v63  ;;  %v4516_v22 = vpop.f32.mrb[37].mxu0 }
 0xe7e   :  { %v3010_v23 = vpop.f32.mrb[38].mxu0 }
 0xe7f   :  { %v3015_v24 = vadd.f32 %v3010_v23, %v2854_v3  ;;  %v4517_v25 = vpop.f32.mrb[39].mxu0 }
 0xe80   :  { %v1985_v25 = vld [vmem:[#allocation12] sm:$0xf] }
 0xe9c   :  { %v3115_v26 = vpop.f32.mrb[40].mxu0 }
 0xe9d   :  { %v4536_v27 = vpop.f32.mrb[41].mxu0 }
 0xe9e   :  { %v3118_v28 = vpop.f32.mrb[42].mxu0 }
 0xe9f   :  { %v3125_v29 = vpack.c.bf16 %v3118_v28, %v3115_v26  ;;  %v4537_v30 = vpop.f32.mrb[43].mxu0 }
 0xea1   :  { %4539 = vmatpush3.bf16.msra.mxu1 %v3125_v29 }
 0xea2   :  { %4544 = vmatprep.subr.bf16.mxu1 %v5003_v0 }
 0xea4   :  { %4541 = vmatmul.mubr.msk.bf16.vlgmr.msra.gmra.mrb[76].mxu1 %vm321_vm4, %v4779_v31 }
 0xea5   :  { %4545 = vmatpush3.bf16.msra.mxu1 %v4780_v32  ;;  %4560 = vmatprep.mubr.msk.bf16.mxu1 %vm5004_vm0, %v5003_v0 }
 0xea6   :  { %4546 = vmatprep.subr.bf16.mxu1 %v5003_v0 }
 0xea9   :  { %4547 = vmatpush3.bf16.msra.mxu1 %v4781_v33  ;;  %v4798_v33 = vld [vmem:[%s5654_s2] sm:$0x7f]  }
 0xeaa   :  { %4548 = vmatprep.subr.bf16.mxu1 %v5003_v0 }
 0xead   :  { %4549 = vmatpush3.bf16.msra.mxu1 %v4782_v34  ;;  %v5006_v34 = vmov 0.0|0.0  }
 0xeae   :  { %4550 = vmatprep.subr.bf16.mxu1 %v5003_v0 }
 0xeb1   :  { %4551 = vmatpush3.bf16.msra.mxu1 %v4783_v36 }
 0xeb2   :  { %4552 = vmatprep.subr.bf16.mxu1 %v5003_v0 }
 0xeb5   :  { %4553 = vmatpush3.bf16.msra.mxu1 %v4784_v38 }
 0xeb6   :  { %4554 = vmatprep.subr.bf16.mxu1 %v5003_v0 }
 0xeb9   :  { %4555 = vmatpush3.bf16.msra.mxu1 %v4785_v39 }
 0xeba   :  { %4556 = vmatprep.subr.bf16.mxu1 %v5003_v0 }
 0xebd   :  { %4557 = vmatpush3.bf16.msra.mxu1 %v4786_v41 }
 0xebe   :  { %4558 = vmatprep.subr.bf16.mxu1 %v5003_v0 }
 0xec1   :  { %4559 = vmatpush3.bf16.msra.mxu1 %v4787_v42 }
 0xec2   :  { %4590 = vmatprep.subr.bf16.mxu1 %v5003_v0 }
 0xec4   :  { %4561 = vmatmul.mubr.bf16.vlgmr.msra.gmra.mrb[80].mxu1 %v5450_v40 }
 0xec5   :  { %4592 = vmatprep.mubr.msk.bf16.mxu1 %vm5004_vm0, %v5003_v0 }
 0xf77   :  { %v3168_v43 = vpop.f32.mrb[76].mxu1 }
 0xf78   :  { %v3175_v44 = vadd.f32 %v3168_v43, %v3014_v21  ;;  %v4542_v45 = vpop.f32.mrb[77].mxu1 }
 0xf79   :  { %v3171_v46 = vpop.f32.mrb[78].mxu1 }
 0xf7a   :  { %v3176_v47 = vadd.f32 %v3171_v46, %v3015_v24  ;;  %v4543_v48 = vpop.f32.mrb[79].mxu1 }
 0xf97   :  { %v3276_v49 = vpop.f32.mrb[80].mxu1 }
 0xf98   :  { %v4562_v50 = vpop.f32.mrb[81].mxu1 }
 0xf99   :  { %v3279_v51 = vpop.f32.mrb[82].mxu1 }
 0xf9a   :  { %v3286_v52 = vpack.c.bf16 %v3279_v51, %v3276_v49  ;;  %v4563_v53 = vpop.f32.mrb[83].mxu1 }
 0xf9c   :  { %4565 = vmatpush3.bf16.msra.mxu0 %v3286_v52 }
 0xf9d   :  { %4570 = vmatprep.subr.bf16.mxu0 %v5003_v0 }
 0xf9f   :  { %4567 = vmatmul.mubr.msk.bf16.vlgmr.msra.gmra.mrb[44].mxu0 %vm321_vm4, %v4788_v54 }
 0xfa0   :  { %4571 = vmatpush3.bf16.msra.mxu0 %v4789_v55  ;;  %4586 = vmatprep.mubr.msk.bf16.mxu0 %vm5004_vm0, %v5003_v0 }
 0xfa1   :  { %4572 = vmatprep.subr.bf16.mxu0 %v5003_v0 }
 0xfa4   :  { %4573 = vmatpush3.bf16.msra.mxu0 %v4790_v56 }
 0xfa5   :  { %4574 = vmatprep.subr.bf16.mxu0 %v5003_v0 }
 0xfa8   :  { %4575 = vmatpush3.bf16.msra.mxu0 %v4791_v57 }
 0xfa9   :  { %4576 = vmatprep.subr.bf16.mxu0 %v5003_v0 }
 0xfac   :  { %4577 = vmatpush3.bf16.msra.mxu0 %v4792_v58 }
 0xfad   :  { %4578 = vmatprep.subr.bf16.mxu0 %v5003_v0 }
 0xfb0   :  { %4579 = vmatpush3.bf16.msra.mxu0 %v4793_v59 }
 0xfb1   :  { %4580 = vmatprep.subr.bf16.mxu0 %v5003_v0 }
 0xfb4   :  { %4581 = vmatpush3.bf16.msra.mxu0 %v4794_v60 }
 0xfb5   :  { %4582 = vmatprep.subr.bf16.mxu0 %v5003_v0 }
 0xfb8   :  { %4583 = vmatpush3.bf16.msra.mxu0 %v4795_v61 }
 0xfb9   :  { %4584 = vmatprep.subr.bf16.mxu0 %v5003_v0 }
 0xfbc   :  { %4585 = vmatpush3.bf16.msra.mxu0 %v4796_v62 }
 0xfbf   :  { %4587 = vmatmul.mubr.bf16.vlgmr.msra.gmra.mrb[48].mxu0 %v5450_v40 }
0x1072   :  { %v3329_v37 = vpop.f32.mrb[44].mxu0 }
0x1073   :  { %v3336_v35 = vadd.f32 %v3329_v37, %v3175_v44  ;;  %v4568_v63 = vpop.f32.mrb[45].mxu0 }
0x1074   :  { %v3332_v1 = vpop.f32.mrb[46].mxu0 }
0x1075   :  { %v3337_v2 = vadd.f32 %v3332_v1, %v3176_v47  ;;  %v4569_v3 = vpop.f32.mrb[47].mxu0  ;;  %v3562_v1 = vld [vmem:[#allocation13] sm:$0x7] }
0x1092   :  { %v3437_v4 = vpop.f32.mrb[48].mxu0 }
0x1093   :  { %v4588_v5 = vpop.f32.mrb[49].mxu0 }
0x1094   :  { %v3440_v6 = vpop.f32.mrb[50].mxu0 }
0x1095   :  { %v3447_v7 = vpack.c.bf16 %v3440_v6, %v3437_v4  ;;  %v4589_v9 = vpop.f32.mrb[51].mxu0 }
0x1097   :  { %4591 = vmatpush3.bf16.msra.mxu1 %v3447_v7 }
0x1098   :  { %4596 = vmatprep.subr.bf16.mxu1 %v5003_v0 }
0x109a   :  { %4593 = vmatmul.mubr.msk.bf16.vlgmr.msra.gmra.mrb[84].mxu1 %vm321_vm4, %v4797_v10 }
0x109b   :  { %4598 = vmatprep.mubr.msk.bf16.mxu1 %vm5004_vm0, %v5003_v0 }
0x116d   :  { %v3490_v40 = vpop.f32.mrb[84].mxu1 }
0x116e   :  { %v3497_v11 = vadd.f32 %v3490_v40, %v3336_v35  ;;  %v4594_v12 = vpop.f32.mrb[85].mxu1 }
0x116f   :  { %v3493_v14 = vpop.f32.mrb[86].mxu1 }
0x1170   :  { %v3509_v15 = vadd.f32 %v3502_v13, %v3497_v11  ;;  %v3498_v16 = vadd.f32 %v3493_v14, %v3337_v2  ;;  %v4595_v17 = vpop.f32.mrb[87].mxu1 }
0x1172   :  { %v3511_v19 = vmul.f32 0.2, %v3509_v15  ;;  %v3510_v20 = vadd.f32 %v3507_v18, %v3498_v16 }
0x1174   :  { %v3512_v21 = vmul.f32 0.2, %v3510_v20  ;;  %v3513_v22 = vmax.f32 %v3509_v15, %v3511_v19 }
0x1176   :  { %v3514_v23 = vmax.f32 %v3510_v20, %v3512_v21 }
0x1178   :  { %v3515_v24 = vpack.c.bf16 %v3514_v23, %v3513_v22 }
0x117a   :  { %4597 = vmatpush3.bf16.msra.mxu1 %v3515_v24 }
0x117b   :  { %4602 = vmatprep.subr.bf16.mxu1 %v5003_v0 }
0x117d   :  { %4599 = vmatmul.mubr.msk.bf16.vlgmr.msra.gmra.mrb[88].mxu1 %vm321_vm4, %v1985_v25 }
0x117e   :  { %4604 = vmatprep.mubr.msk.bf16.mxu1 %vm5004_vm0, %v5003_v0 }
0x1250   :  { %v3553_v26 = vpop.f32.mrb[88].mxu1 }
0x1251   :  { %v3559_v27 = vadd.f32 %v3553_v26, %v5427_v8  ;;  %v4600_v28 = vpop.f32.mrb[89].mxu1 }
0x1252   :  { %v3556_v29 = vpop.f32.mrb[90].mxu1 }
0x1253   :  { %v3563_v30 = vpack.c.bf16 %v3559_v27, %v3559_v27  ;;  %v4601_v31 = vpop.f32.mrb[91].mxu1 }
0x1255   :  { %v3573_v32 = vsel %vm2006_vm5, %v3563_v30, 0 }
0x1256   :  { %4603 = vmatpush3.bf16.msra.mxu1 %v3573_v32 }
0x1257   :  { %4619 = vmatprep.subr.bf16.mxu1 %v5006_v34 }
0x1259   :  { %4605 = vmatmul.mubr.msk.bf16.vlgmr.msra.gmra.mrb[92].mxu1 %vm2002_vm6, %v4798_v33 }
0x125a   :  { %4612 = vmatprep.mubr.msk.f32.mxu1 %vm5004_vm0, %v5003_v0 }
0x132c   :  { %v3609_v36 = vpop.f32.mrb[92].mxu1 }
0x132d   :  { %v4606_v8 = vpop.f32.mrb[93].mxu1 }
0x132e   :  { %v3612_v38 = vpop.f32.mrb[94].mxu1 }
0x132f   :  { %v3617_v39 = vsel %vm3616_vm7, %v3612_v38, -inf  ;;  %v4607_v41 = vpop.f32.mrb[95].mxu1 }
0x1330   :  { %v3618_v42 = vmax.f32 %v3609_v36, %v3617_v39 }
0x1332   :  { %v3619_v43 = vrot.slane %v3618_v42, 4 }
0x1334   :  { %v3620_v44 = vmax.f32 %v3618_v42, %v3619_v43 }
0x1336   :  { %v3621_v45 = vrot.slane %v3620_v44, 2 }
0x1338   :  { %v3622_v46 = vmax.f32 %v3620_v44, %v3621_v45 }
0x133a   :  { %v3623_v47 = vrot.slane %v3622_v46, 1 }
0x133c   :  { %v3624_v48 = vmax.f32 %v3622_v46, %v3623_v47 }
0x133e   :  { %v3625_v49 = vsub.f32 %v3609_v36, %v3624_v48  ;;  %v3626_v50 = vsub.f32 %v3612_v38, %v3624_v48 }
0x1340   :  { %v3627_v51 = vmul.f32 1.442695, %v3625_v49  ;;  %v3629_v0 = vmul.f32 1.442695, %v3626_v50 }
0x1342   :  { %4799 = vpow2.f32 %v3627_v51 }
0x1343   :  { %4801 = vpow2.f32 %v3629_v0 }
0x134c   :  { %v4800_v52 = vpop.eup %4799 }
0x134d   :  { %v4802_v53 = vpop.eup %4801 }
0x134e   :  { %v3631_v54 = vsel %vm3616_vm7, %v4802_v53, 0.0 }
0x134f   :  { %v3632_v55 = vadd.f32 %v4800_v52, %v3631_v54 }
0x1351   :  { %v3633_v56 = vrot.slane %v3632_v55, 4 }
0x1353   :  { %v3634_v57 = vadd.f32 %v3633_v56, %v3632_v55 }
0x1355   :  { %v3635_v58 = vrot.slane %v3634_v57, 2 }
0x1357   :  { %v3636_v59 = vadd.f32 %v3635_v58, %v3634_v57 }
0x1359   :  { %v3637_v60 = vrot.slane %v3636_v59, 1 }
0x135b   :  { %v3638_v61 = vadd.f32 %v3637_v60, %v3636_v59 }
0x135d   :  { %4803 = vrcp.f32 %v3638_v61 }
0x1367   :  { %v4804_v62 = vpop.eup %4803 }
0x1368   :  { %v3641_v37 = vmul.f32 %v4804_v62, %v4802_v53  ;;  %v3640_v35 = vmul.f32 %v4804_v62, %v4800_v52 }
0x136a   :  { %v4620_v63 = vpack.c.bf16 %v3641_v37, %v3640_v35 }
0x136c   :  { %4622 = vmatpush3.bf16.msk.msra.mxu1 %vm4621_vm9, %v4620_v63 }
0x136f   :  { %4613 = vmatmul.mubr.msk.f32.vlgmr.msra.gmra.mrb[96].mxu1 %vm3642_vm10, %v3562_v1 }
0x1442   :  { %v3715_v2 = vpop.f32.mrb[96].mxu1 }
0x1443   :  { %3719 = vst [vmem:[%s5655_s5] sm:$0x7] %v3715_v2  ;;  %v4614_v3 = vpop.f32.mrb[97].mxu1 }
0x1444   :  { %3724 = vsyncpa [#allocation3], 1 }
0x1445   :  { %3725 = vsyncpa [#allocation5], 1 }
0x1446   :  { %3726 = vsyncpa [#allocation8], 1 }
0x1447   :  { %3727 = vsyncpa [#allocation11], 1 }
0x1448   :  { %3728 = vsyncpa [#allocation14], 1 }

</bundles_post_ra>
